<compile_context>
chip_gen: v7x
topology: tpu7x:2x2x1
jax: 0.10.0
libtpu: 0.0.40
codegen_flags: <defaults>
</compile_context>

<pallas_src>
import functools

import jax
import jax.numpy as jnp
from jax.experimental import pallas as pl
from jax.experimental.pallas import tpu as pltpu


D_IN = 2048
D_HID = 512
D_OUT = 8
D_OUT_PAD = 128   # pad fc2 N-dim to one full lane width (128) -> unmasked vst


def mlp_kernel(x_ref, w1_ref, b1_ref, w2_ref, b2_ref, o_ref):
    # In-kernel cast to bf16 (VPU pack, hidden under the fc1 matmul).
    x = x_ref[...].astype(jnp.bfloat16)
    # fc1: bf16 x bf16 on the MXU, f32 accumulator.
    h = jnp.dot(x, w1_ref[...], preferred_element_type=jnp.float32)
    h = jnp.maximum(h + b1_ref[...], 0.0)                  # bias + ReLU in f32 (VPU)
    # dropout: identity in eval mode.
    # fc2: bf16 activations on the MXU, f32 accumulator; N padded to 128.
    y = jnp.dot(h.astype(jnp.bfloat16), w2_ref[...],
                preferred_element_type=jnp.float32)
    o_ref[...] = (y + b2_ref[...]).astype(o_ref.dtype)     # (tb, 128) unmasked store


def prepare_params(w1, b1, w2, b2):
    """One-time conversion of weights to the kernel layout (call outside the hot path).

    w1: (D_IN, D_HID), w2: (D_HID, D_OUT) — already transposed vs torch's
    (out, in) storage. Per-call casting/padding of ~4.5 MiB of weights was an
    extra HBM pass every forward; doing it once removes that traffic entirely.
    """
    w1_bf = jnp.asarray(w1, jnp.bfloat16)
    b1_2d = jnp.asarray(b1, jnp.float32).reshape(1, D_HID)
    w2_bf = jnp.zeros((D_HID, D_OUT_PAD), jnp.bfloat16).at[:, :D_OUT].set(
        jnp.asarray(w2, jnp.bfloat16))
    b2_2d = jnp.zeros((1, D_OUT_PAD), jnp.float32).at[:, :D_OUT].set(
        jnp.asarray(b2, jnp.float32).reshape(1, D_OUT))
    return w1_bf, b1_2d, w2_bf, b2_2d


def _pick_tb(B):
    # bf16 packs two rows per sublane -> never below 16. Single grid step for
    # anything up to 512 rows (per-step overhead ~0.35 us, and splitting small
    # batches under-fills the MXU); 512-row tiles (multiple of 256) above that
    # (~85% of roofline in measured tile sweeps). VMEM at tb=512 is ~11 MiB.
    if B <= 512:
        return max(16, ((B + 15) // 16) * 16)
    return 512


def mlp_forward(x, params, *, tb=None):
    w1_bf, b1_2d, w2_bf, b2_2d = params
    B = x.shape[0]
    out_dtype = x.dtype

    if tb is None:
        tb = _pick_tb(B)
    assert tb % 16 == 0 and tb > 0, "batch tile must be a positive multiple of 16"

    # No batch padding: cdiv grid; Pallas masks the final partial block.
    grid_b = pl.cdiv(B, tb)

    # Megacore: only shard the batch axis across TensorCores when the per-core
    # work clearly exceeds the (duplicated) resident weight fetch.
    batch_sem = "parallel" if (B >= 2048 and grid_b >= 2) else "arbitrary"

    in_itemsize = jnp.dtype(x.dtype).itemsize
    out_itemsize = jnp.dtype(out_dtype).itemsize
    cost = pl.CostEstimate(
        flops=2 * B * (D_IN * D_HID + D_HID * D_OUT_PAD),
        transcendentals=0,
        bytes_accessed=(B * D_IN * in_itemsize                  # x
                        + D_IN * D_HID * 2 + D_HID * 4          # W1 (bf16) + b1 (f32)
                        + D_HID * D_OUT_PAD * 2 + D_OUT_PAD * 4 # W2 (bf16) + b2 (f32)
                        + B * D_OUT_PAD * out_itemsize),        # out
    )

    # Grid-invariant operands: single-buffered (second pipeline buffer is dead VMEM).
    resident = functools.partial(pl.BlockSpec, pipeline_mode=pl.Buffered(1))

    out_padded = pl.pallas_call(
        mlp_kernel,
        out_shape=jax.ShapeDtypeStruct((B, D_OUT_PAD), out_dtype),
        grid_spec=pltpu.PrefetchScalarGridSpec(
            num_scalar_prefetch=0,
            grid=(grid_b,),
            in_specs=[
                pl.BlockSpec((tb, D_IN), lambda i: (i, 0)),      # x tile (caller dtype)
                resident((D_IN, D_HID), lambda i: (0, 0)),       # W1 (bf16, resident)
                resident((1, D_HID), lambda i: (0, 0)),          # b1 (f32)
                resident((D_HID, D_OUT_PAD), lambda i: (0, 0)),  # W2 padded (bf16)
                resident((1, D_OUT_PAD), lambda i: (0, 0)),      # b2 padded (f32)
            ],
            out_specs=pl.BlockSpec((tb, D_OUT_PAD), lambda i: (i, 0)),
        ),
        compiler_params=pltpu.CompilerParams(
            dimension_semantics=(batch_sem,),
            vmem_limit_bytes=32 * 1024 * 1024,
        ),
        cost_estimate=cost,
    )(x, w1_bf, b1_2d, w2_bf, b2_2d)

    # Strip the padded output lanes (no batch slicing needed: no batch padding).
    return out_padded[:, :D_OUT]


def init_params(key):
    """Deterministic init mimicking PyTorch nn.Linear default (uniform +-1/sqrt(fan_in))."""
    k1, k2, k3, k4 = jax.random.split(key, 4)
    lim1 = 1.0 / (D_IN ** 0.5)
    lim2 = 1.0 / (D_HID ** 0.5)
    w1 = jax.random.uniform(k1, (D_IN, D_HID), jnp.float32, -lim1, lim1)
    b1 = jax.random.uniform(k2, (D_HID,), jnp.float32, -lim1, lim1)
    w2 = jax.random.uniform(k3, (D_HID, D_OUT), jnp.float32, -lim2, lim2)
    b2 = jax.random.uniform(k4, (D_OUT,), jnp.float32, -lim2, lim2)
    return w1, b1, w2, b2


if __name__ == "__main__":
    key = jax.random.PRNGKey(0)
    kx, kp = jax.random.split(key)

    B = 16  # small batch -> tb=16 (min bf16 tile), single grid step
    x = jax.random.normal(kx, (B, D_IN), jnp.float32)
    w1, b1, w2, b2 = init_params(kp)

    params = prepare_params(w1, b1, w2, b2)   # one-time weight conversion
    fwd = jax.jit(mlp_forward)

    out = jax.block_until_ready(fwd(x, params))
    assert out.shape == (B, D_OUT)

    # Reference with the same bf16 operand rounding but plain-JAX f32 math.
    xb = x.astype(jnp.bfloat16).astype(jnp.float32)
    w1b = w1.astype(jnp.bfloat16).astype(jnp.float32)
    w2b = w2.astype(jnp.bfloat16).astype(jnp.float32)
    h_ref = jnp.maximum(xb @ w1b + b1, 0.0)
    ref = h_ref.astype(jnp.bfloat16).astype(jnp.float32) @ w2b + b2
    assert jnp.allclose(out, ref, atol=1e-2, rtol=1e-2)

    # Sanity check vs pure-f32 reference (looser, bf16 rounding error).
    ref_f32 = jnp.maximum(x @ w1 + b1, 0.0) @ w2 + b2
    assert jnp.allclose(out, ref_f32, atol=5e-2, rtol=5e-2)

    print("KERNEL_OK")
</pallas_src>

<mosaic_0001>
module attributes {stable_mosaic.version = 11 : i64} {
  func.func @mlp_kernel(%arg0: i32, %arg1: memref<16x2048xf32, #tpu.memory_space<vmem>>, %arg2: memref<2048x512xbf16, #tpu.memory_space<vmem>>, %arg3: memref<1x512xf32, #tpu.memory_space<vmem>>, %arg4: memref<512x128xbf16, #tpu.memory_space<vmem>>, %arg5: memref<1x128xf32, #tpu.memory_space<vmem>>, %arg6: memref<16x128xf32, #tpu.memory_space<vmem>>) attributes {dimension_semantics = [#tpu.dimension_semantics<arbitrary>], iteration_bounds = array<i64: 1>, scalar_prefetch = 0 : i64, scratch_operands = 0 : i64, tpu.core_type = #tpu.core_type<tc>, window_params = [{transform_indices = @transform_0, window_bounds = array<i64: 16, 2048>}, {pipeline_mode = #tpu.pipeline_mode<synchronous>, transform_indices = @transform_1, window_bounds = array<i64: 2048, 512>}, {pipeline_mode = #tpu.pipeline_mode<synchronous>, transform_indices = @transform_2, window_bounds = array<i64: 1, 512>}, {pipeline_mode = #tpu.pipeline_mode<synchronous>, transform_indices = @transform_3, window_bounds = array<i64: 512, 128>}, {pipeline_mode = #tpu.pipeline_mode<synchronous>, transform_indices = @transform_4, window_bounds = array<i64: 1, 128>}, {transform_indices = @transform_5, window_bounds = array<i64: 16, 128>}]} {
    %c0 = arith.constant 0 : index
    %c0_0 = arith.constant 0 : index
    %0 = vector.load %arg1[%c0, %c0_0] : memref<16x2048xf32, #tpu.memory_space<vmem>>, vector<16x2048xf32>
    %1 = arith.truncf %0 : vector<16x2048xf32> to vector<16x2048xbf16>
    %c0_1 = arith.constant 0 : index
    %c0_2 = arith.constant 0 : index
    %2 = vector.load %arg2[%c0_1, %c0_2] : memref<2048x512xbf16, #tpu.memory_space<vmem>>, vector<2048x512xbf16>
    %cst = arith.constant dense<0.000000e+00> : vector<16x512xf32>
    %3 = tpu.matmul %1, %2, %cst {dimension_numbers = #tpu.dot_dimension_numbers<[1], [0], [0], [1], [0, 0, 1, 1], [], []>} : vector<16x2048xbf16>, vector<2048x512xbf16>, vector<16x512xf32> -> vector<16x512xf32>
    %c0_3 = arith.constant 0 : index
    %c0_4 = arith.constant 0 : index
    %4 = vector.load %arg3[%c0_3, %c0_4] : memref<1x512xf32, #tpu.memory_space<vmem>>, vector<1x512xf32>
    %5 = vector.broadcast %4 : vector<1x512xf32> to vector<16x512xf32>
    %6 = arith.addf %3, %5 : vector<16x512xf32>
    %cst_5 = arith.constant 0.000000e+00 : f32
    %7 = vector.broadcast %cst_5 : f32 to vector<16x512xf32>
    %8 = arith.maximumf %6, %7 : vector<16x512xf32>
    %9 = arith.truncf %8 : vector<16x512xf32> to vector<16x512xbf16>
    %c0_6 = arith.constant 0 : index
    %c0_7 = arith.constant 0 : index
    %10 = vector.load %arg4[%c0_6, %c0_7] : memref<512x128xbf16, #tpu.memory_space<vmem>>, vector<512x128xbf16>
    %cst_8 = arith.constant dense<0.000000e+00> : vector<16x128xf32>
    %11 = tpu.matmul %9, %10, %cst_8 {dimension_numbers = #tpu.dot_dimension_numbers<[1], [0], [0], [1], [0, 0, 1, 1], [], []>} : vector<16x512xbf16>, vector<512x128xbf16>, vector<16x128xf32> -> vector<16x128xf32>
    %c0_9 = arith.constant 0 : index
    %c0_10 = arith.constant 0 : index
    %12 = vector.load %arg5[%c0_9, %c0_10] : memref<1x128xf32, #tpu.memory_space<vmem>>, vector<1x128xf32>
    %13 = vector.broadcast %12 : vector<1x128xf32> to vector<16x128xf32>
    %14 = arith.addf %11, %13 : vector<16x128xf32>
    %c0_11 = arith.constant 0 : index
    %c0_12 = arith.constant 0 : index
    %15 = vector.load %arg6[%c0_11, %c0_12] : memref<16x128xf32, #tpu.memory_space<vmem>>, vector<16x128xf32>
    tpu.vector_store %arg6[%c0_11, %c0_12], %14 {strides = array<i32>} : memref<16x128xf32, #tpu.memory_space<vmem>>, vector<16x128xf32>,
    return
  }
  func.func @transform_0(%arg0: i32) -> (i32, i32) {
    %c0_i32 = arith.constant 0 : i32
    %c0_i32_0 = arith.constant 0 : i32
    return %arg0, %c0_i32 : i32, i32
  }
  func.func @transform_1(%arg0: i32) -> (i32, i32) {
    %c0_i32 = arith.constant 0 : i32
    %c0_i32_0 = arith.constant 0 : i32
    %c0_i32_1 = arith.constant 0 : i32
    return %c0_i32, %c0_i32_0 : i32, i32
  }
  func.func @transform_2(%arg0: i32) -> (i32, i32) {
    %c0_i32 = arith.constant 0 : i32
    %c0_i32_0 = arith.constant 0 : i32
    %c0_i32_1 = arith.constant 0 : i32
    return %c0_i32, %c0_i32_0 : i32, i32
  }
  func.func @transform_3(%arg0: i32) -> (i32, i32) {
    %c0_i32 = arith.constant 0 : i32
    %c0_i32_0 = arith.constant 0 : i32
    %c0_i32_1 = arith.constant 0 : i32
    return %c0_i32, %c0_i32_0 : i32, i32
  }
  func.func @transform_4(%arg0: i32) -> (i32, i32) {
    %c0_i32 = arith.constant 0 : i32
    %c0_i32_0 = arith.constant 0 : i32
    %c0_i32_1 = arith.constant 0 : i32
    return %c0_i32, %c0_i32_0 : i32, i32
  }
  func.func @transform_5(%arg0: i32) -> (i32, i32) {
    %c0_i32 = arith.constant 0 : i32
    %c0_i32_0 = arith.constant 0 : i32
    return %arg0, %c0_i32 : i32, i32
  }
}

</mosaic_0001>

<bundles_post_ra>
// kernel: mlp_forward.1
= control target key start
LH: loop header
LB: loop body
LE: loop exit
PB: predicated region body
PF: predicated region fallthrough
CT: control target
= control target key end

     0   :  { %10 = vsyncpa [#allocation3], 0  ;;  %s5968_s0 = inlined_call_operand.hbm [shape: f32[16,2048], index: 0, kind: input, shape index: {}]   ;;  %s5969_s1 = inlined_call_operand.hbm [shape: bf16[2048,512], index: 1, kind: input, shape index: {}]   ;;  %s5970_s2 = inlined_call_operand.hbm [shape: f32[1,512], index: 2, kind: input, shape index: {}]   ;;  %s5971_s3 = inlined_call_operand.hbm [shape: bf16[512,128], index: 3, kind: input, shape index: {}]   ;;  %s5972_s4 = inlined_call_operand.hbm [shape: f32[1,128], index: 4, kind: input, shape index: {}]   ;;  %s5973_s5 = inlined_call_operand.vmem [shape: f32[16,128], index: 5, kind: output, shape index: {}]  }
   0x1   :  { %11 = vsyncpa [#allocation5], 0 }
   0x2   :  { %12 = vsyncpa [#allocation8], 0  ;;  %s5861_s18 = smov [#allocation4]   ;;  %s5745_s22 = scalar_lea.hbm %s5969_s1, 65536 }
   0x3   :  { %s30_s19 = sshll.u32 %s5861_s18, 4  ;;  %p5746_p0 = scmp.ne.s32.totalorder %s5969_s1, %s5745_s22  ;;  %s31_s19 = int_to_ptr.vmem [resolvable:$true] %s30_s19 }
   0x4   :  { %p5749_p1 = scmp.lt.u32.totalorder %s5745_s22, %s5969_s1 }
   0x6   :  { %p5751_p2 = pnand %p5749_p1, %p5746_p0 }
   0x8   :  { %5754 = shalt.err (!%p5751_p2)
}
   0x9   :  { %s5755_s27 = scalar_lea.vmem %s31_s19, 65536  ;;  %p5760_p4 = scmp.lt.s32.totalorder %s31_s19, %s31_s19 }
   0xa   :  { %p5756_p3 = scmp.ne.s32.totalorder %s31_s19, %s5755_s27  ;;  %p5761_p5 = scmp.lt.s32.totalorder %s5755_s27, %s5755_s27 }
   0xc   :  { %p5762_p6 = por %p5761_p5, %p5760_p4 }
   0xe   :  { %p5763_p7 = pnand %p5762_p6, %p5756_p3 }
  0x10   :  { %5766 = shalt.err (!%p5763_p7)
}
  0x11   :  { %s5862_s28 = smov 256   ;;  %s5863_s29 = smov 16  }
  0x12   :  { %36 = dma.hbm_to_vmem [thread:$0]  %s5969_s1, 65536, %s31_s19, [#allocation5], %s5862_s28, %s5862_s28, %s5863_s29  }
  0x13   :  { %s5864_s7 = smov [#allocation7]   ;;  %s5767_s11 = scalar_lea.hbm %s5971_s3, 4096 }
  0x14   :  { %s52_s8 = sshll.u32 %s5864_s7, 4  ;;  %p5768_p8 = scmp.ne.s32.totalorder %s5971_s3, %s5767_s11  ;;  %s53_s8 = int_to_ptr.vmem [resolvable:$true] %s52_s8 }
  0x15   :  { %p5771_p9 = scmp.lt.u32.totalorder %s5767_s11, %s5971_s3 }
  0x17   :  { %p5773_p10 = pnand %p5771_p9, %p5768_p8 }
  0x19   :  { %5776 = shalt.err (!%p5773_p10)
}
  0x1a   :  { %s5777_s16 = scalar_lea.vmem %s53_s8, 4096  ;;  %p5782_p12 = scmp.lt.s32.totalorder %s53_s8, %s53_s8 }
  0x1b   :  { %p5778_p11 = scmp.ne.s32.totalorder %s53_s8, %s5777_s16  ;;  %p5783_p13 = scmp.lt.s32.totalorder %s5777_s16, %s5777_s16 }
  0x1d   :  { %p5784_p0 = por %p5783_p13, %p5782_p12 }
  0x1f   :  { %p5785_p1 = pnand %p5784_p0, %p5778_p11 }
  0x21   :  { %5788 = shalt.err (!%p5785_p1)
}
  0x22   :  { %s5865_s1 = smov 64   ;;  %s5866_s17 = smov 4  }
  0x23   :  { %58 = dma.hbm_to_vmem [thread:$0]  %s5971_s3, 4096, %s53_s8, [#allocation8], %s5865_s1, %s5865_s1, %s5866_s17  }
  0x24   :  { %s5867_s20 = smov [#allocation2]   ;;  %s5789_s24 = scalar_lea.hbm %s5968_s0, 4096 }
  0x25   :  { %s18_s21 = sshll.u32 %s5867_s20, 4  ;;  %p5790_p2 = scmp.ne.s32.totalorder %s5968_s0, %s5789_s24  ;;  %s19_s21 = int_to_ptr.vmem [resolvable:$true] %s18_s21 }
  0x26   :  { %p5793_p3 = scmp.lt.u32.totalorder %s5789_s24, %s5968_s0 }
  0x28   :  { %p5795_p4 = pnand %p5793_p3, %p5790_p2 }
  0x2a   :  { %5798 = shalt.err (!%p5795_p4)
}
  0x2b   :  { %s5799_s29 = scalar_lea.vmem %s19_s21, 4096  ;;  %p5804_p6 = scmp.lt.s32.totalorder %s19_s21, %s19_s21 }
  0x2c   :  { %p5800_p5 = scmp.ne.s32.totalorder %s19_s21, %s5799_s29  ;;  %p5805_p7 = scmp.lt.s32.totalorder %s5799_s29, %s5799_s29 }
  0x2e   :  { %p5806_p8 = por %p5805_p7, %p5804_p6 }
  0x30   :  { %p5807_p9 = pnand %p5806_p8, %p5800_p5 }
  0x32   :  { %5810 = shalt.err (!%p5807_p9)
}
  0x33   :  { %s5868_s3 = smov 2048   ;;  %s5869_s30 = smov 128  }
  0x34   :  { %24 = dma.hbm_to_vmem [thread:$0]  %s5968_s0, 4096, %s19_s21, [#allocation3], %s5868_s3, %s5868_s3, %s5869_s30  }
  0x35   :  { %s5870_s8 = smov [#allocation6]   ;;  %s5871_s10 = smov [#allocation9]  }
  0x36   :  { %s43_s9 = sshll.u32 %s5870_s8, 4  ;;  %s65_s11 = sshll.u32 %s5871_s10, 4  ;;  %s44_s9 = int_to_ptr.vmem [resolvable:$true] %s43_s9  ;;  %s66_s11 = int_to_ptr.vmem [resolvable:$true] %s65_s11 }
  0x37   :  { %s5811_s14 = scalar_lea.hbm %s5970_s2, 64 }
  0x38   :  { %p5812_p10 = scmp.ne.s32.totalorder %s5970_s2, %s5811_s14  ;;  %p5815_p11 = scmp.lt.u32.totalorder %s5811_s14, %s5970_s2 }
  0x3a   :  { %p5817_p12 = pnand %p5815_p11, %p5812_p10 }
  0x3c   :  { %5820 = shalt.err (!%p5817_p12)
}
  0x3d   :  { %s5821_s0 = scalar_lea.vmem %s44_s9, 64  ;;  %p5826_p0 = scmp.lt.s32.totalorder %s44_s9, %s44_s9 }
  0x3e   :  { %p5822_p13 = scmp.ne.s32.totalorder %s44_s9, %s5821_s0  ;;  %p5827_p1 = scmp.lt.s32.totalorder %s5821_s0, %s5821_s0 }
  0x40   :  { %p5828_p2 = por %p5827_p1, %p5826_p0 }
  0x42   :  { %p5829_p3 = pnand %p5828_p2, %p5822_p13 }
  0x44   :  { %5832 = shalt.err (!%p5829_p3)
}
  0x45   :  { %46 = dma.hbm_to_vmem [thread:$0]  %s5970_s2, 64, %s44_s9, [#allocation5]  }
  0x46   :  { %s5833_s22 = scalar_lea.hbm %s5972_s4, 16 }
  0x47   :  { %p5834_p4 = scmp.ne.s32.totalorder %s5972_s4, %s5833_s22  ;;  %p5837_p5 = scmp.lt.u32.totalorder %s5833_s22, %s5972_s4 }
  0x49   :  { %p5839_p6 = pnand %p5837_p5, %p5834_p4 }
  0x4b   :  { %5842 = shalt.err (!%p5839_p6)
}
  0x4c   :  { %s5843_s27 = scalar_lea.vmem %s66_s11, 16  ;;  %s5847_s28 = scalar_lea.vmem %s66_s11, 32 }
  0x4d   :  { %p5844_p7 = scmp.ne.s32.totalorder %s66_s11, %s5843_s27  ;;  %p5848_p8 = scmp.lt.s32.totalorder %s66_s11, %s66_s11 }
  0x4e   :  { %p5849_p9 = scmp.lt.s32.totalorder %s5847_s28, %s5843_s27 }
  0x50   :  { %p5850_p10 = por %p5849_p9, %p5848_p8 }
  0x52   :  { %p5851_p11 = pnand %p5850_p10, %p5844_p7 }
  0x54   :  { %5854 = shalt.err (!%p5851_p11)
}
  0x55   :  { %68 = dma.hbm_to_vmem [thread:$0]  %s5972_s4, 16, %s66_s11, [#allocation8]  }
  0x56   :  { %5855 = dma.done.wait [#allocation3], 4096  }
  0x57   :  { %5856 = vsyncadd [#allocation3], 4294963200 }
  0x58   :  { %5857 = dma.done.wait [#allocation5], 65600  }
  0x59   :  { %5858 = vsyncadd [#allocation5], 4294901696 }
  0x5a   :  { %5859 = dma.done.wait [#allocation8], 4112  }
  0x5b   :  { %5860 = vsyncadd [#allocation8], 4294963184  ;;  %v4945_v0 = vld [vmem:[#allocation4 + $0x4] ss:$16 sps:$4 sm:$0xff]   ;;  %v4947_v1 = vld [vmem:[#allocation4 + $0xc] ss:$16 sps:$4 sm:$0xff]  }
  0x5c   :  { %3227 = vmatprep.subr.bf16.mxu0 %v4945_v0  ;;  %v4949_v2 = vld [vmem:[#allocation4] ss:$16 sps:$4 sm:$0xff]   ;;  %v4950_v3 = vld [vmem:[#allocation4 + $0x8] ss:$16 sps:$4 sm:$0xff]   ;;  %3571 = vmatprep.subr.bf16.mxu1 %v4947_v1  ;;  %v4951_v4 = vld [vmem:[#allocation4 + $0x24] ss:$16 sps:$4 sm:$0xff]  }
  0x5d   :  { %3228 = vmatpush1.bf16.msra.mxu0 %v4949_v2  ;;  %3572 = vmatpush1.bf16.msra.mxu1 %v4950_v3  ;;  %v4953_v5 = vld [vmem:[#allocation4 + $0x2c] ss:$16 sps:$4 sm:$0xff]   ;;  %v4955_v6 = vld [vmem:[#allocation4 + $0x20] ss:$16 sps:$4 sm:$0xff]   ;;  %v4956_v7 = vld [vmem:[#allocation4 + $0x28] ss:$16 sps:$4 sm:$0xff]  }
  0x5e   :  { %3229 = vmatprep.subr.bf16.mxu0 %v4951_v4  ;;  %3573 = vmatprep.subr.bf16.mxu1 %v4953_v5  ;;  %v4957_v8 = vld [vmem:[#allocation4 + $0x44] ss:$16 sps:$4 sm:$0xff]   ;;  %v4959_v9 = vld [vmem:[#allocation4 + $0x4c] ss:$16 sps:$4 sm:$0xff]   ;;  %v4961_v10 = vld [vmem:[#allocation4 + $0x40] ss:$16 sps:$4 sm:$0xff]  }
  0x5f   :  { %v4962_v11 = vld [vmem:[#allocation4 + $0x48] ss:$16 sps:$4 sm:$0xff]   ;;  %v4963_v12 = vld [vmem:[#allocation4 + $0x64] ss:$16 sps:$4 sm:$0xff]   ;;  %v4965_v13 = vld [vmem:[#allocation4 + $0x6c] ss:$16 sps:$4 sm:$0xff]  }
  0x60   :  { %v4967_v14 = vld [vmem:[#allocation4 + $0x60] ss:$16 sps:$4 sm:$0xff]   ;;  %v4968_v15 = vld [vmem:[#allocation4 + $0x68] ss:$16 sps:$4 sm:$0xff]   ;;  %v4969_v16 = vld [vmem:[#allocation4 + $0x84] ss:$16 sps:$4 sm:$0xff]  }
  0x61   :  { %3230 = vmatpush1.bf16.msra.mxu0 %v4955_v6  ;;  %3574 = vmatpush1.bf16.msra.mxu1 %v4956_v7  ;;  %v4971_v17 = vld [vmem:[#allocation4 + $0x8c] ss:$16 sps:$4 sm:$0xff]   ;;  %v4973_v18 = vld [vmem:[#allocation4 + $0x80] ss:$16 sps:$4 sm:$0xff]   ;;  %v4974_v19 = vld [vmem:[#allocation4 + $0x88] ss:$16 sps:$4 sm:$0xff]  }
  0x62   :  { %3231 = vmatprep.subr.bf16.mxu0 %v4957_v8  ;;  %3575 = vmatprep.subr.bf16.mxu1 %v4959_v9  ;;  %v4975_v20 = vld [vmem:[#allocation4 + $0xa4] ss:$16 sps:$4 sm:$0xff]   ;;  %v4977_v21 = vld [vmem:[#allocation4 + $0xac] ss:$16 sps:$4 sm:$0xff]   ;;  %v4979_v22 = vld [vmem:[#allocation4 + $0xa0] ss:$16 sps:$4 sm:$0xff]  }
  0x63   :  { %v4980_v23 = vld [vmem:[#allocation4 + $0xa8] ss:$16 sps:$4 sm:$0xff]   ;;  %v4981_v24 = vld [vmem:[#allocation4 + $0xc4] ss:$16 sps:$4 sm:$0xff]   ;;  %v4983_v25 = vld [vmem:[#allocation4 + $0xcc] ss:$16 sps:$4 sm:$0xff]  }
  0x64   :  { %v4985_v26 = vld [vmem:[#allocation4 + $0xc0] ss:$16 sps:$4 sm:$0xff]   ;;  %v4986_v27 = vld [vmem:[#allocation4 + $0xc8] ss:$16 sps:$4 sm:$0xff]   ;;  %v4987_v28 = vld [vmem:[#allocation4 + $0xe4] ss:$16 sps:$4 sm:$0xff]  }
  0x65   :  { %3232 = vmatpush1.bf16.msra.mxu0 %v4961_v10  ;;  %3576 = vmatpush1.bf16.msra.mxu1 %v4962_v11  ;;  %v4989_v29 = vld [vmem:[#allocation4 + $0xec] ss:$16 sps:$4 sm:$0xff]   ;;  %v4991_v30 = vld [vmem:[#allocation4 + $0xe0] ss:$16 sps:$4 sm:$0xff]   ;;  %v4992_v31 = vld [vmem:[#allocation4 + $0xe8] ss:$16 sps:$4 sm:$0xff]  }
  0x66   :  { %3233 = vmatprep.subr.bf16.mxu0 %v4963_v12  ;;  %3577 = vmatprep.subr.bf16.mxu1 %v4965_v13  ;;  %v4993_v32 = vld [vmem:[#allocation4 + $0x104] ss:$16 sps:$4 sm:$0xff]   ;;  %v4995_v33 = vld [vmem:[#allocation4 + $0x10c] ss:$16 sps:$4 sm:$0xff]   ;;  %v4997_v34 = vld [vmem:[#allocation4 + $0x100] ss:$16 sps:$4 sm:$0xff]  }
  0x67   :  { %v4998_v35 = vld [vmem:[#allocation4 + $0x108] ss:$16 sps:$4 sm:$0xff]   ;;  %v4999_v36 = vld [vmem:[#allocation4 + $0x124] ss:$16 sps:$4 sm:$0xff]   ;;  %v5001_v37 = vld [vmem:[#allocation4 + $0x12c] ss:$16 sps:$4 sm:$0xff]  }
  0x68   :  { %v5003_v38 = vld [vmem:[#allocation4 + $0x120] ss:$16 sps:$4 sm:$0xff]   ;;  %v5004_v39 = vld [vmem:[#allocation4 + $0x128] ss:$16 sps:$4 sm:$0xff]   ;;  %v5005_v40 = vld [vmem:[#allocation4 + $0x144] ss:$16 sps:$4 sm:$0xff]  }
  0x69   :  { %3234 = vmatpush1.bf16.msra.mxu0 %v4967_v14  ;;  %3578 = vmatpush1.bf16.msra.mxu1 %v4968_v15  ;;  %v5007_v41 = vld [vmem:[#allocation4 + $0x14c] ss:$16 sps:$4 sm:$0xff]   ;;  %v5009_v42 = vld [vmem:[#allocation4 + $0x140] ss:$16 sps:$4 sm:$0xff]   ;;  %v5010_v43 = vld [vmem:[#allocation4 + $0x148] ss:$16 sps:$4 sm:$0xff]  }
  0x6a   :  { %3235 = vmatprep.subr.bf16.mxu0 %v4969_v16  ;;  %3579 = vmatprep.subr.bf16.mxu1 %v4971_v17  ;;  %v5011_v44 = vld [vmem:[#allocation4 + $0x164] ss:$16 sps:$4 sm:$0xff]   ;;  %v5013_v45 = vld [vmem:[#allocation4 + $0x16c] ss:$16 sps:$4 sm:$0xff]   ;;  %v5015_v48 = vld [vmem:[#allocation4 + $0x160] ss:$16 sps:$4 sm:$0xff]  }
  0x6b   :  { %v86_v46 = vld [vmem:[#allocation2 + $0x8] sm:$0xff]  ;;  %v5017_v51 = vld [vmem:[#allocation4 + $0x184] ss:$16 sps:$4 sm:$0xff]   ;;  %v5021_v53 = vld [vmem:[#allocation4 + $0x180] ss:$16 sps:$4 sm:$0xff]  }
  0x6c   :  { %v102_v47 = vld [vmem:[#allocation2 + $0x88] sm:$0xff]  ;;  %v5023_v55 = vld [vmem:[#allocation4 + $0x1a4] ss:$16 sps:$4 sm:$0xff]   ;;  %v5027_v57 = vld [vmem:[#allocation4 + $0x1a0] ss:$16 sps:$4 sm:$0xff]  }
  0x6d   :  { %3236 = vmatpush1.bf16.msra.mxu0 %v4973_v18  ;;  %3580 = vmatpush1.bf16.msra.mxu1 %v4974_v19  ;;  %v5016_v49 = vld [vmem:[#allocation4 + $0x168] ss:$16 sps:$4 sm:$0xff]   ;;  %v118_v50 = vpack.c.bf16 %v102_v47, %v86_v46  ;;  %v5019_v52 = vld [vmem:[#allocation4 + $0x18c] ss:$16 sps:$4 sm:$0xff]   ;;  %v5029_v59 = vld [vmem:[#allocation4 + $0x1c4] ss:$16 sps:$4 sm:$0xff]  }
  0x6e   :  { %3237 = vmatprep.subr.bf16.mxu0 %v4975_v20  ;;  %3581 = vmatprep.subr.bf16.mxu1 %v4977_v21  ;;  %v5022_v54 = vld [vmem:[#allocation4 + $0x188] ss:$16 sps:$4 sm:$0xff]   ;;  %v5025_v56 = vld [vmem:[#allocation4 + $0x1ac] ss:$16 sps:$4 sm:$0xff]   ;;  %v5033_v61 = vld [vmem:[#allocation4 + $0x1c0] ss:$16 sps:$4 sm:$0xff]  }
  0x6f   :  { %3259 = vmatprep.mubr.bf16.mxu0 %v118_v50  ;;  %3603 = vmatprep.mubr.bf16.mxu1 %v118_v50  ;;  %v5028_v58 = vld [vmem:[#allocation4 + $0x1a8] ss:$16 sps:$4 sm:$0xff]   ;;  %v5031_v60 = vld [vmem:[#allocation4 + $0x1cc] ss:$16 sps:$4 sm:$0xff]   ;;  %v5035_v63 = vld [vmem:[#allocation4 + $0x1e4] ss:$16 sps:$4 sm:$0xff]  }
  0x70   :  { %v5034_v62 = vld [vmem:[#allocation4 + $0x1c8] ss:$16 sps:$4 sm:$0xff]   ;;  %v5037_v0 = vld [vmem:[#allocation4 + $0x1ec] ss:$16 sps:$4 sm:$0xff]   ;;  %v5039_v1 = vld [vmem:[#allocation4 + $0x1e0] ss:$16 sps:$4 sm:$0xff]  }
  0x71   :  { %3238 = vmatpush1.bf16.msra.mxu0 %v4979_v22  ;;  %3582 = vmatpush1.bf16.msra.mxu1 %v4980_v23  ;;  %v5040_v2 = vld [vmem:[#allocation4 + $0x1e8] ss:$16 sps:$4 sm:$0xff]   ;;  %v5043_v3 = vld [vmem:[#allocation4 + $0x204] ss:$16 sps:$4 sm:$0xff]   ;;  %v5046_v6 = vld [vmem:[#allocation4 + $0x20c] ss:$16 sps:$4 sm:$0xff]  }
  0x72   :  { %3239 = vmatprep.subr.bf16.mxu0 %v4981_v24  ;;  %3583 = vmatprep.subr.bf16.mxu1 %v4983_v25  ;;  %v85_v4 = vld [vmem:[#allocation2] sm:$0xff]  ;;  %v5044_v8 = vld [vmem:[#allocation4 + $0x208] ss:$16 sps:$4 sm:$0xff]   ;;  %v5052_v11 = vld [vmem:[#allocation4 + $0x22c] ss:$16 sps:$4 sm:$0xff]  }
  0x73   :  { %v101_v5 = vld [vmem:[#allocation2 + $0x80] sm:$0xff]  ;;  %v5050_v13 = vld [vmem:[#allocation4 + $0x228] ss:$16 sps:$4 sm:$0xff]   ;;  %v5058_v15 = vld [vmem:[#allocation4 + $0x24c] ss:$16 sps:$4 sm:$0xff]  }
  0x74   :  { %v5041_v7 = vld [vmem:[#allocation4 + $0x200] ss:$16 sps:$4 sm:$0xff]   ;;  %v117_v9 = vpack.c.bf16 %v101_v5, %v85_v4  ;;  %v5049_v10 = vld [vmem:[#allocation4 + $0x224] ss:$16 sps:$4 sm:$0xff]   ;;  %v5056_v17 = vld [vmem:[#allocation4 + $0x248] ss:$16 sps:$4 sm:$0xff]  }
  0x75   :  { %3240 = vmatpush1.bf16.msra.mxu0 %v4985_v26  ;;  %3584 = vmatpush1.bf16.msra.mxu1 %v4986_v27  ;;  %v5047_v12 = vld [vmem:[#allocation4 + $0x220] ss:$16 sps:$4 sm:$0xff]   ;;  %v5055_v14 = vld [vmem:[#allocation4 + $0x244] ss:$16 sps:$4 sm:$0xff]   ;;  %v5064_v19 = vld [vmem:[#allocation4 + $0x26c] ss:$16 sps:$4 sm:$0xff]  }
  0x76   :  { %3241 = vmatprep.subr.bf16.mxu0 %v4987_v28  ;;  %3585 = vmatprep.subr.bf16.mxu1 %v4989_v29  ;;  %v5053_v16 = vld [vmem:[#allocation4 + $0x240] ss:$16 sps:$4 sm:$0xff]   ;;  %v5061_v18 = vld [vmem:[#allocation4 + $0x264] ss:$16 sps:$4 sm:$0xff]   ;;  %v5062_v21 = vld [vmem:[#allocation4 + $0x268] ss:$16 sps:$4 sm:$0xff]  }
  0x77   :  { %v5059_v20 = vld [vmem:[#allocation4 + $0x260] ss:$16 sps:$4 sm:$0xff]   ;;  %v5067_v22 = vld [vmem:[#allocation4 + $0x284] ss:$16 sps:$4 sm:$0xff]   ;;  %v5070_v23 = vld [vmem:[#allocation4 + $0x28c] ss:$16 sps:$4 sm:$0xff]  }
  0x78   :  { %v5065_v24 = vld [vmem:[#allocation4 + $0x280] ss:$16 sps:$4 sm:$0xff]   ;;  %v5068_v25 = vld [vmem:[#allocation4 + $0x288] ss:$16 sps:$4 sm:$0xff]   ;;  %v5073_v26 = vld [vmem:[#allocation4 + $0x2a4] ss:$16 sps:$4 sm:$0xff]  }
  0x79   :  { %3242 = vmatpush1.bf16.msra.mxu0 %v4991_v30  ;;  %3586 = vmatpush1.bf16.msra.mxu1 %v4992_v31  ;;  %v5076_v27 = vld [vmem:[#allocation4 + $0x2ac] ss:$16 sps:$4 sm:$0xff]   ;;  %v5071_v28 = vld [vmem:[#allocation4 + $0x2a0] ss:$16 sps:$4 sm:$0xff]   ;;  %v5074_v29 = vld [vmem:[#allocation4 + $0x2a8] ss:$16 sps:$4 sm:$0xff]  }
  0x7a   :  { %3243 = vmatprep.subr.bf16.mxu0 %v4993_v32  ;;  %3587 = vmatprep.subr.bf16.mxu1 %v4995_v33  ;;  %v5079_v30 = vld [vmem:[#allocation4 + $0x2c4] ss:$16 sps:$4 sm:$0xff]   ;;  %v5082_v31 = vld [vmem:[#allocation4 + $0x2cc] ss:$16 sps:$4 sm:$0xff]   ;;  %v5095_v47 = vld [vmem:[#allocation4 + $0x320] ss:$16 sps:$4 sm:$0xff]  }
  0x7b   :  { %v88_v32 = vld [vmem:[#allocation2 + $0x18] sm:$0xff]  ;;  %v5133_v5 = vld [vmem:[#allocation4 + $0x3e4] ss:$16 sps:$4 sm:$0xff]  }
  0x7c   :  { %v104_v33 = vld [vmem:[#allocation2 + $0x98] sm:$0xff] }
  0x7d   :  { %3244 = vmatpush1.bf16.msra.mxu0 %v4997_v34  ;;  %3588 = vmatpush1.bf16.msra.mxu1 %v4998_v35  ;;  %v5077_v34 = vld [vmem:[#allocation4 + $0x2c0] ss:$16 sps:$4 sm:$0xff]   ;;  %v5080_v35 = vld [vmem:[#allocation4 + $0x2c8] ss:$16 sps:$4 sm:$0xff]   ;;  %v5100_v46 = vld [vmem:[#allocation4 + $0x32c] ss:$16 sps:$4 sm:$0xff]  }
  0x7e   :  { %3245 = vmatprep.subr.bf16.mxu0 %v4999_v36  ;;  %3589 = vmatprep.subr.bf16.mxu1 %v5001_v37  ;;  %v120_v36 = vpack.c.bf16 %v104_v33, %v88_v32  ;;  %v5085_v37 = vld [vmem:[#allocation4 + $0x2e4] ss:$16 sps:$4 sm:$0xff]   ;;  %v5106_v50 = vld [vmem:[#allocation4 + $0x34c] ss:$16 sps:$4 sm:$0xff]   ;;  %v5128_v4 = vld [vmem:[#allocation4 + $0x3c8] ss:$16 sps:$4 sm:$0xff]  }
  0x7f   :  { %v5166_v32 = vld [vmem:[#allocation4 + $0x48c] ss:$16 sps:$4 sm:$0xff]   ;;  %v5161_v33 = vld [vmem:[#allocation4 + $0x480] ss:$16 sps:$4 sm:$0xff]  }
  0x81   :  { %3246 = vmatpush1.bf16.msra.mxu0 %v5003_v38  ;;  %3590 = vmatpush1.bf16.msra.mxu1 %v5004_v39  ;;  %v5088_v38 = vld [vmem:[#allocation4 + $0x2ec] ss:$16 sps:$4 sm:$0xff]   ;;  %v5083_v39 = vld [vmem:[#allocation4 + $0x2e0] ss:$16 sps:$4 sm:$0xff]  }
  0x82   :  { %3247 = vmatprep.subr.bf16.mxu0 %v5005_v40  ;;  %3591 = vmatprep.subr.bf16.mxu1 %v5007_v41  ;;  %v5086_v40 = vld [vmem:[#allocation4 + $0x2e8] ss:$16 sps:$4 sm:$0xff]   ;;  %v5091_v41 = vld [vmem:[#allocation4 + $0x304] ss:$16 sps:$4 sm:$0xff]  }
  0x85   :  { %3248 = vmatpush1.bf16.msra.mxu0 %v5009_v42  ;;  %3592 = vmatpush1.bf16.msra.mxu1 %v5010_v43  ;;  %v5094_v42 = vld [vmem:[#allocation4 + $0x30c] ss:$16 sps:$4 sm:$0xff]   ;;  %v5089_v43 = vld [vmem:[#allocation4 + $0x300] ss:$16 sps:$4 sm:$0xff]  }
  0x86   :  { %3249 = vmatprep.subr.bf16.mxu0 %v5011_v44  ;;  %3593 = vmatprep.subr.bf16.mxu1 %v5013_v45  ;;  %v5092_v44 = vld [vmem:[#allocation4 + $0x308] ss:$16 sps:$4 sm:$0xff]   ;;  %v5097_v45 = vld [vmem:[#allocation4 + $0x324] ss:$16 sps:$4 sm:$0xff]  }
  0x89   :  { %3250 = vmatpush1.bf16.msra.mxu0 %v5015_v48  ;;  %3594 = vmatpush1.bf16.msra.mxu1 %v5016_v49  ;;  %v5098_v48 = vld [vmem:[#allocation4 + $0x328] ss:$16 sps:$4 sm:$0xff]   ;;  %v5103_v49 = vld [vmem:[#allocation4 + $0x344] ss:$16 sps:$4 sm:$0xff]  }
  0x8a   :  { %3251 = vmatprep.subr.bf16.mxu0 %v5017_v51  ;;  %3595 = vmatprep.subr.bf16.mxu1 %v5019_v52  ;;  %v5101_v51 = vld [vmem:[#allocation4 + $0x340] ss:$16 sps:$4 sm:$0xff]   ;;  %v5104_v52 = vld [vmem:[#allocation4 + $0x348] ss:$16 sps:$4 sm:$0xff]  }
  0x8d   :  { %3252 = vmatpush1.bf16.msra.mxu0 %v5021_v53  ;;  %3596 = vmatpush1.bf16.msra.mxu1 %v5022_v54  ;;  %v5109_v53 = vld [vmem:[#allocation4 + $0x364] ss:$16 sps:$4 sm:$0xff]   ;;  %v5112_v54 = vld [vmem:[#allocation4 + $0x36c] ss:$16 sps:$4 sm:$0xff]  }
  0x8e   :  { %3253 = vmatprep.subr.bf16.mxu0 %v5023_v55  ;;  %3597 = vmatprep.subr.bf16.mxu1 %v5025_v56  ;;  %v5107_v55 = vld [vmem:[#allocation4 + $0x360] ss:$16 sps:$4 sm:$0xff]   ;;  %v5110_v56 = vld [vmem:[#allocation4 + $0x368] ss:$16 sps:$4 sm:$0xff]  }
  0x91   :  { %3254 = vmatpush1.bf16.msra.mxu0 %v5027_v57  ;;  %3598 = vmatpush1.bf16.msra.mxu1 %v5028_v58  ;;  %v5115_v57 = vld [vmem:[#allocation4 + $0x384] ss:$16 sps:$4 sm:$0xff]   ;;  %v5118_v58 = vld [vmem:[#allocation4 + $0x38c] ss:$16 sps:$4 sm:$0xff]  }
  0x92   :  { %3255 = vmatprep.subr.bf16.mxu0 %v5029_v59  ;;  %3599 = vmatprep.subr.bf16.mxu1 %v5031_v60  ;;  %v5113_v59 = vld [vmem:[#allocation4 + $0x380] ss:$16 sps:$4 sm:$0xff]   ;;  %v5116_v60 = vld [vmem:[#allocation4 + $0x388] ss:$16 sps:$4 sm:$0xff]  }
  0x95   :  { %3256 = vmatpush1.bf16.msra.mxu0 %v5033_v61  ;;  %3600 = vmatpush1.bf16.msra.mxu1 %v5034_v62  ;;  %v5121_v61 = vld [vmem:[#allocation4 + $0x3a4] ss:$16 sps:$4 sm:$0xff]   ;;  %v5124_v62 = vld [vmem:[#allocation4 + $0x3ac] ss:$16 sps:$4 sm:$0xff]  }
  0x96   :  { %3257 = vmatprep.subr.bf16.mxu0 %v5035_v63  ;;  %3601 = vmatprep.subr.bf16.mxu1 %v5037_v0  ;;  %v5119_v63 = vld [vmem:[#allocation4 + $0x3a0] ss:$16 sps:$4 sm:$0xff]   ;;  %v5122_v0 = vld [vmem:[#allocation4 + $0x3a8] ss:$16 sps:$4 sm:$0xff]  }
  0x99   :  { %3258 = vmatpush1.bf16.msra.mxu0 %v5039_v1  ;;  %3602 = vmatpush1.bf16.msra.mxu1 %v5040_v2  ;;  %v5127_v1 = vld [vmem:[#allocation4 + $0x3c4] ss:$16 sps:$4 sm:$0xff]   ;;  %v5130_v2 = vld [vmem:[#allocation4 + $0x3cc] ss:$16 sps:$4 sm:$0xff]  }
  0x9a   :  { %3270 = vmatprep.subr.bf16.mxu0 %v5043_v3  ;;  %3614 = vmatprep.subr.bf16.mxu1 %v5046_v6  ;;  %v5125_v3 = vld [vmem:[#allocation4 + $0x3c0] ss:$16 sps:$4 sm:$0xff]   ;;  %v5136_v6 = vld [vmem:[#allocation4 + $0x3ec] ss:$16 sps:$4 sm:$0xff]  }
  0x9c   :  { %3260 = vmatmul.mubr.bf16.vlgmr.msra.gmra.mrb[0].mxu0 %v117_v9  ;;  %3604 = vmatmul.mubr.bf16.vlgmr.msra.gmra.mrb[0].mxu1 %v117_v9  ;;  %v5139_v9 = vld [vmem:[#allocation4 + $0x404] ss:$16 sps:$4 sm:$0xff]  }
  0x9d   :  { %3271 = vmatpush1.bf16.msra.mxu0 %v5041_v7  ;;  %3615 = vmatpush1.bf16.msra.mxu1 %v5044_v8  ;;  %v5131_v7 = vld [vmem:[#allocation4 + $0x3e0] ss:$16 sps:$4 sm:$0xff]   ;;  %v5134_v8 = vld [vmem:[#allocation4 + $0x3e8] ss:$16 sps:$4 sm:$0xff]  }
  0x9e   :  { %3272 = vmatprep.subr.bf16.mxu0 %v5049_v10  ;;  %3616 = vmatprep.subr.bf16.mxu1 %v5052_v11  ;;  %v87_v10 = vld [vmem:[#allocation2 + $0x10] sm:$0xff] }
  0x9f   :  { %3302 = vmatprep.mubr.bf16.mxu0 %v120_v36  ;;  %3646 = vmatprep.mubr.bf16.mxu1 %v120_v36  ;;  %v103_v11 = vld [vmem:[#allocation2 + $0x90] sm:$0xff]  ;;  %v5172_v36 = vld [vmem:[#allocation4 + $0x4ac] ss:$16 sps:$4 sm:$0xff]  }
  0xa1   :  { %3273 = vmatpush1.bf16.msra.mxu0 %v5047_v12  ;;  %3617 = vmatpush1.bf16.msra.mxu1 %v5050_v13  ;;  %v5142_v12 = vld [vmem:[#allocation4 + $0x40c] ss:$16 sps:$4 sm:$0xff]   ;;  %v5137_v13 = vld [vmem:[#allocation4 + $0x400] ss:$16 sps:$4 sm:$0xff]  }
  0xa2   :  { %3274 = vmatprep.subr.bf16.mxu0 %v5055_v14  ;;  %3618 = vmatprep.subr.bf16.mxu1 %v5058_v15  ;;  %v5140_v14 = vld [vmem:[#allocation4 + $0x408] ss:$16 sps:$4 sm:$0xff]   ;;  %v119_v15 = vpack.c.bf16 %v103_v11, %v87_v10  ;;  %v5229_v11 = vld [vmem:[#allocation4 + $0x5e4] ss:$16 sps:$4 sm:$0xff]  }
  0xa3   :  { %v5224_v10 = vld [vmem:[#allocation4 + $0x5c8] ss:$16 sps:$4 sm:$0xff]  }
  0xa5   :  { %3275 = vmatpush1.bf16.msra.mxu0 %v5053_v16  ;;  %3619 = vmatpush1.bf16.msra.mxu1 %v5056_v17  ;;  %v5145_v16 = vld [vmem:[#allocation4 + $0x424] ss:$16 sps:$4 sm:$0xff]   ;;  %v5148_v17 = vld [vmem:[#allocation4 + $0x42c] ss:$16 sps:$4 sm:$0xff]  }
  0xa6   :  { %3276 = vmatprep.subr.bf16.mxu0 %v5061_v18  ;;  %3620 = vmatprep.subr.bf16.mxu1 %v5064_v19  ;;  %v90_v18 = vld [vmem:[#allocation2 + $0x28] sm:$0xff] }
  0xa7   :  { %v106_v19 = vld [vmem:[#allocation2 + $0xa8] sm:$0xff] }
  0xa9   :  { %3277 = vmatpush1.bf16.msra.mxu0 %v5059_v20  ;;  %3621 = vmatpush1.bf16.msra.mxu1 %v5062_v21  ;;  %v5143_v20 = vld [vmem:[#allocation4 + $0x420] ss:$16 sps:$4 sm:$0xff]   ;;  %v5146_v21 = vld [vmem:[#allocation4 + $0x428] ss:$16 sps:$4 sm:$0xff]  }
  0xaa   :  { %3278 = vmatprep.subr.bf16.mxu0 %v5067_v22  ;;  %3622 = vmatprep.subr.bf16.mxu1 %v5070_v23  ;;  %v122_v22 = vpack.c.bf16 %v106_v19, %v90_v18  ;;  %v5151_v23 = vld [vmem:[#allocation4 + $0x444] ss:$16 sps:$4 sm:$0xff]   ;;  %v5238_v18 = vld [vmem:[#allocation4 + $0x60c] ss:$16 sps:$4 sm:$0xff]   ;;  %v5233_v19 = vld [vmem:[#allocation4 + $0x600] ss:$16 sps:$4 sm:$0xff]  }
  0xad   :  { %3279 = vmatpush1.bf16.msra.mxu0 %v5065_v24  ;;  %3623 = vmatpush1.bf16.msra.mxu1 %v5068_v25  ;;  %v5154_v24 = vld [vmem:[#allocation4 + $0x44c] ss:$16 sps:$4 sm:$0xff]   ;;  %v5149_v25 = vld [vmem:[#allocation4 + $0x440] ss:$16 sps:$4 sm:$0xff]  }
  0xae   :  { %3280 = vmatprep.subr.bf16.mxu0 %v5073_v26  ;;  %3624 = vmatprep.subr.bf16.mxu1 %v5076_v27  ;;  %v5152_v26 = vld [vmem:[#allocation4 + $0x448] ss:$16 sps:$4 sm:$0xff]   ;;  %v5157_v27 = vld [vmem:[#allocation4 + $0x464] ss:$16 sps:$4 sm:$0xff]  }
  0xb1   :  { %3281 = vmatpush1.bf16.msra.mxu0 %v5071_v28  ;;  %3625 = vmatpush1.bf16.msra.mxu1 %v5074_v29  ;;  %v5160_v28 = vld [vmem:[#allocation4 + $0x46c] ss:$16 sps:$4 sm:$0xff]   ;;  %v5155_v29 = vld [vmem:[#allocation4 + $0x460] ss:$16 sps:$4 sm:$0xff]  }
  0xb2   :  { %3282 = vmatprep.subr.bf16.mxu0 %v5079_v30  ;;  %3626 = vmatprep.subr.bf16.mxu1 %v5082_v31  ;;  %v5158_v30 = vld [vmem:[#allocation4 + $0x468] ss:$16 sps:$4 sm:$0xff]   ;;  %v5163_v31 = vld [vmem:[#allocation4 + $0x484] ss:$16 sps:$4 sm:$0xff]  }
  0xb5   :  { %3283 = vmatpush1.bf16.msra.mxu0 %v5077_v34  ;;  %3627 = vmatpush1.bf16.msra.mxu1 %v5080_v35  ;;  %v5164_v34 = vld [vmem:[#allocation4 + $0x488] ss:$16 sps:$4 sm:$0xff]   ;;  %v5169_v35 = vld [vmem:[#allocation4 + $0x4a4] ss:$16 sps:$4 sm:$0xff]  }
  0xb6   :  { %3284 = vmatprep.subr.bf16.mxu0 %v5085_v37  ;;  %3628 = vmatprep.subr.bf16.mxu1 %v5088_v38  ;;  %v5167_v37 = vld [vmem:[#allocation4 + $0x4a0] ss:$16 sps:$4 sm:$0xff]   ;;  %v5170_v38 = vld [vmem:[#allocation4 + $0x4a8] ss:$16 sps:$4 sm:$0xff]  }
  0xb9   :  { %3285 = vmatpush1.bf16.msra.mxu0 %v5083_v39  ;;  %3629 = vmatpush1.bf16.msra.mxu1 %v5086_v40  ;;  %v5175_v39 = vld [vmem:[#allocation4 + $0x4c4] ss:$16 sps:$4 sm:$0xff]   ;;  %v5178_v40 = vld [vmem:[#allocation4 + $0x4cc] ss:$16 sps:$4 sm:$0xff]  }
  0xba   :  { %3286 = vmatprep.subr.bf16.mxu0 %v5091_v41  ;;  %3630 = vmatprep.subr.bf16.mxu1 %v5094_v42  ;;  %v5173_v41 = vld [vmem:[#allocation4 + $0x4c0] ss:$16 sps:$4 sm:$0xff]   ;;  %v5176_v42 = vld [vmem:[#allocation4 + $0x4c8] ss:$16 sps:$4 sm:$0xff]  }
  0xbd   :  { %3287 = vmatpush1.bf16.msra.mxu0 %v5089_v43  ;;  %3631 = vmatpush1.bf16.msra.mxu1 %v5092_v44  ;;  %v5181_v43 = vld [vmem:[#allocation4 + $0x4e4] ss:$16 sps:$4 sm:$0xff]   ;;  %v5184_v44 = vld [vmem:[#allocation4 + $0x4ec] ss:$16 sps:$4 sm:$0xff]  }
  0xbe   :  { %3288 = vmatprep.subr.bf16.mxu0 %v5097_v45  ;;  %3632 = vmatprep.subr.bf16.mxu1 %v5100_v46  ;;  %v5179_v45 = vld [vmem:[#allocation4 + $0x4e0] ss:$16 sps:$4 sm:$0xff]   ;;  %v5182_v46 = vld [vmem:[#allocation4 + $0x4e8] ss:$16 sps:$4 sm:$0xff]  }
  0xc1   :  { %3289 = vmatpush1.bf16.msra.mxu0 %v5095_v47  ;;  %3633 = vmatpush1.bf16.msra.mxu1 %v5098_v48  ;;  %v5187_v47 = vld [vmem:[#allocation4 + $0x504] ss:$16 sps:$4 sm:$0xff]   ;;  %v5190_v48 = vld [vmem:[#allocation4 + $0x50c] ss:$16 sps:$4 sm:$0xff]  }
  0xc2   :  { %3290 = vmatprep.subr.bf16.mxu0 %v5103_v49  ;;  %3634 = vmatprep.subr.bf16.mxu1 %v5106_v50  ;;  %v5185_v49 = vld [vmem:[#allocation4 + $0x500] ss:$16 sps:$4 sm:$0xff]   ;;  %v5188_v50 = vld [vmem:[#allocation4 + $0x508] ss:$16 sps:$4 sm:$0xff]  }
  0xc5   :  { %3291 = vmatpush1.bf16.msra.mxu0 %v5101_v51  ;;  %3635 = vmatpush1.bf16.msra.mxu1 %v5104_v52  ;;  %v5193_v51 = vld [vmem:[#allocation4 + $0x524] ss:$16 sps:$4 sm:$0xff]   ;;  %v5196_v52 = vld [vmem:[#allocation4 + $0x52c] ss:$16 sps:$4 sm:$0xff]  }
  0xc6   :  { %3292 = vmatprep.subr.bf16.mxu0 %v5109_v53  ;;  %3636 = vmatprep.subr.bf16.mxu1 %v5112_v54  ;;  %v5191_v53 = vld [vmem:[#allocation4 + $0x520] ss:$16 sps:$4 sm:$0xff]   ;;  %v5194_v54 = vld [vmem:[#allocation4 + $0x528] ss:$16 sps:$4 sm:$0xff]  }
  0xc9   :  { %3293 = vmatpush1.bf16.msra.mxu0 %v5107_v55  ;;  %3637 = vmatpush1.bf16.msra.mxu1 %v5110_v56  ;;  %v5199_v55 = vld [vmem:[#allocation4 + $0x544] ss:$16 sps:$4 sm:$0xff]   ;;  %v5202_v56 = vld [vmem:[#allocation4 + $0x54c] ss:$16 sps:$4 sm:$0xff]  }
  0xca   :  { %3294 = vmatprep.subr.bf16.mxu0 %v5115_v57  ;;  %3638 = vmatprep.subr.bf16.mxu1 %v5118_v58  ;;  %v5197_v57 = vld [vmem:[#allocation4 + $0x540] ss:$16 sps:$4 sm:$0xff]   ;;  %v5200_v58 = vld [vmem:[#allocation4 + $0x548] ss:$16 sps:$4 sm:$0xff]  }
  0xcd   :  { %3295 = vmatpush1.bf16.msra.mxu0 %v5113_v59  ;;  %3639 = vmatpush1.bf16.msra.mxu1 %v5116_v60  ;;  %v5205_v59 = vld [vmem:[#allocation4 + $0x564] ss:$16 sps:$4 sm:$0xff]   ;;  %v5208_v60 = vld [vmem:[#allocation4 + $0x56c] ss:$16 sps:$4 sm:$0xff]  }
  0xce   :  { %3296 = vmatprep.subr.bf16.mxu0 %v5121_v61  ;;  %3640 = vmatprep.subr.bf16.mxu1 %v5124_v62  ;;  %v5203_v61 = vld [vmem:[#allocation4 + $0x560] ss:$16 sps:$4 sm:$0xff]   ;;  %v5206_v62 = vld [vmem:[#allocation4 + $0x568] ss:$16 sps:$4 sm:$0xff]  }
  0xd1   :  { %3297 = vmatpush1.bf16.msra.mxu0 %v5119_v63  ;;  %3641 = vmatpush1.bf16.msra.mxu1 %v5122_v0  ;;  %v5211_v63 = vld [vmem:[#allocation4 + $0x584] ss:$16 sps:$4 sm:$0xff]   ;;  %v5214_v0 = vld [vmem:[#allocation4 + $0x58c] ss:$16 sps:$4 sm:$0xff]  }
  0xd2   :  { %3298 = vmatprep.subr.bf16.mxu0 %v5127_v1  ;;  %3642 = vmatprep.subr.bf16.mxu1 %v5130_v2  ;;  %v5209_v1 = vld [vmem:[#allocation4 + $0x580] ss:$16 sps:$4 sm:$0xff]   ;;  %v5212_v2 = vld [vmem:[#allocation4 + $0x588] ss:$16 sps:$4 sm:$0xff]  }
  0xd5   :  { %3299 = vmatpush1.bf16.msra.mxu0 %v5125_v3  ;;  %3643 = vmatpush1.bf16.msra.mxu1 %v5128_v4  ;;  %v5217_v3 = vld [vmem:[#allocation4 + $0x5a4] ss:$16 sps:$4 sm:$0xff]   ;;  %v5220_v4 = vld [vmem:[#allocation4 + $0x5ac] ss:$16 sps:$4 sm:$0xff]  }
  0xd6   :  { %3300 = vmatprep.subr.bf16.mxu0 %v5133_v5  ;;  %3644 = vmatprep.subr.bf16.mxu1 %v5136_v6  ;;  %v5215_v5 = vld [vmem:[#allocation4 + $0x5a0] ss:$16 sps:$4 sm:$0xff]   ;;  %v5218_v6 = vld [vmem:[#allocation4 + $0x5a8] ss:$16 sps:$4 sm:$0xff]  }
  0xd9   :  { %3301 = vmatpush1.bf16.msra.mxu0 %v5131_v7  ;;  %3645 = vmatpush1.bf16.msra.mxu1 %v5134_v8  ;;  %v5223_v7 = vld [vmem:[#allocation4 + $0x5c4] ss:$16 sps:$4 sm:$0xff]   ;;  %v5226_v8 = vld [vmem:[#allocation4 + $0x5cc] ss:$16 sps:$4 sm:$0xff]  }
  0xda   :  { %3313 = vmatprep.subr.bf16.mxu0 %v5139_v9  ;;  %3657 = vmatprep.subr.bf16.mxu1 %v5142_v12  ;;  %v5221_v9 = vld [vmem:[#allocation4 + $0x5c0] ss:$16 sps:$4 sm:$0xff]   ;;  %v5232_v12 = vld [vmem:[#allocation4 + $0x5ec] ss:$16 sps:$4 sm:$0xff]  }
  0xdc   :  { %3303 = vmatmul.mubr.bf16.vlgmr.msra.gmra.mrb[0].mxu0 %v119_v15  ;;  %3647 = vmatmul.mubr.bf16.vlgmr.msra.gmra.mrb[0].mxu1 %v119_v15  ;;  %v5235_v15 = vld [vmem:[#allocation4 + $0x604] ss:$16 sps:$4 sm:$0xff]  }
  0xdd   :  { %3314 = vmatpush1.bf16.msra.mxu0 %v5137_v13  ;;  %3658 = vmatpush1.bf16.msra.mxu1 %v5140_v14  ;;  %v5227_v13 = vld [vmem:[#allocation4 + $0x5e0] ss:$16 sps:$4 sm:$0xff]   ;;  %v5230_v14 = vld [vmem:[#allocation4 + $0x5e8] ss:$16 sps:$4 sm:$0xff]  }
  0xde   :  { %3315 = vmatprep.subr.bf16.mxu0 %v5145_v16  ;;  %3659 = vmatprep.subr.bf16.mxu1 %v5148_v17  ;;  %v89_v16 = vld [vmem:[#allocation2 + $0x20] sm:$0xff] }
  0xdf   :  { %3345 = vmatprep.mubr.bf16.mxu0 %v122_v22  ;;  %3689 = vmatprep.mubr.bf16.mxu1 %v122_v22  ;;  %v105_v17 = vld [vmem:[#allocation2 + $0xa0] sm:$0xff]  ;;  %v92_v22 = vld [vmem:[#allocation2 + $0x38] sm:$0xff] }
  0xe1   :  { %3316 = vmatpush1.bf16.msra.mxu0 %v5143_v20  ;;  %3660 = vmatpush1.bf16.msra.mxu1 %v5146_v21  ;;  %v5236_v20 = vld [vmem:[#allocation4 + $0x608] ss:$16 sps:$4 sm:$0xff]   ;;  %v121_v21 = vpack.c.bf16 %v105_v17, %v89_v16  ;;  %v5325_v17 = vld [vmem:[#allocation4 + $0x7e4] ss:$16 sps:$4 sm:$0xff]  }
  0xe2   :  { %3317 = vmatprep.subr.bf16.mxu0 %v5151_v23  ;;  %3661 = vmatprep.subr.bf16.mxu1 %v5154_v24  ;;  %v108_v23 = vld [vmem:[#allocation2 + $0xb8] sm:$0xff]  ;;  %v5241_v24 = vld [vmem:[#allocation4 + $0x624] ss:$16 sps:$4 sm:$0xff]  }
  0xe3   :  { %v5320_v16 = vld [vmem:[#allocation4 + $0x7c8] ss:$16 sps:$4 sm:$0xff]  }
  0xe5   :  { %3318 = vmatpush1.bf16.msra.mxu0 %v5149_v25  ;;  %3662 = vmatpush1.bf16.msra.mxu1 %v5152_v26  ;;  %v5244_v25 = vld [vmem:[#allocation4 + $0x62c] ss:$16 sps:$4 sm:$0xff]   ;;  %v124_v26 = vpack.c.bf16 %v108_v23, %v92_v22  ;;  %v91_v22 = vld [vmem:[#allocation2 + $0x30] sm:$0xff] }
  0xe6   :  { %3319 = vmatprep.subr.bf16.mxu0 %v5157_v27  ;;  %3663 = vmatprep.subr.bf16.mxu1 %v5160_v28  ;;  %v5239_v27 = vld [vmem:[#allocation4 + $0x620] ss:$16 sps:$4 sm:$0xff]   ;;  %v5242_v28 = vld [vmem:[#allocation4 + $0x628] ss:$16 sps:$4 sm:$0xff]  }
  0xe7   :  { %v107_v23 = vld [vmem:[#allocation2 + $0xb0] sm:$0xff] }
  0xe9   :  { %3320 = vmatpush1.bf16.msra.mxu0 %v5155_v29  ;;  %3664 = vmatpush1.bf16.msra.mxu1 %v5158_v30  ;;  %v5247_v29 = vld [vmem:[#allocation4 + $0x644] ss:$16 sps:$4 sm:$0xff]   ;;  %v5250_v30 = vld [vmem:[#allocation4 + $0x64c] ss:$16 sps:$4 sm:$0xff]  }
  0xea   :  { %3321 = vmatprep.subr.bf16.mxu0 %v5163_v31  ;;  %3665 = vmatprep.subr.bf16.mxu1 %v5166_v32  ;;  %v5245_v31 = vld [vmem:[#allocation4 + $0x640] ss:$16 sps:$4 sm:$0xff]   ;;  %v5248_v32 = vld [vmem:[#allocation4 + $0x648] ss:$16 sps:$4 sm:$0xff]  }
  0xed   :  { %3322 = vmatpush1.bf16.msra.mxu0 %v5161_v33  ;;  %3666 = vmatpush1.bf16.msra.mxu1 %v5164_v34  ;;  %v5253_v33 = vld [vmem:[#allocation4 + $0x664] ss:$16 sps:$4 sm:$0xff]   ;;  %v5256_v34 = vld [vmem:[#allocation4 + $0x66c] ss:$16 sps:$4 sm:$0xff]  }
  0xee   :  { %3323 = vmatprep.subr.bf16.mxu0 %v5169_v35  ;;  %3667 = vmatprep.subr.bf16.mxu1 %v5172_v36  ;;  %v5251_v35 = vld [vmem:[#allocation4 + $0x660] ss:$16 sps:$4 sm:$0xff]   ;;  %v5254_v36 = vld [vmem:[#allocation4 + $0x668] ss:$16 sps:$4 sm:$0xff]  }
  0xf1   :  { %3324 = vmatpush1.bf16.msra.mxu0 %v5167_v37  ;;  %3668 = vmatpush1.bf16.msra.mxu1 %v5170_v38  ;;  %v5259_v37 = vld [vmem:[#allocation4 + $0x684] ss:$16 sps:$4 sm:$0xff]   ;;  %v5262_v38 = vld [vmem:[#allocation4 + $0x68c] ss:$16 sps:$4 sm:$0xff]  }
  0xf2   :  { %3325 = vmatprep.subr.bf16.mxu0 %v5175_v39  ;;  %3669 = vmatprep.subr.bf16.mxu1 %v5178_v40  ;;  %v5257_v39 = vld [vmem:[#allocation4 + $0x680] ss:$16 sps:$4 sm:$0xff]   ;;  %v5260_v40 = vld [vmem:[#allocation4 + $0x688] ss:$16 sps:$4 sm:$0xff]  }
  0xf5   :  { %3326 = vmatpush1.bf16.msra.mxu0 %v5173_v41  ;;  %3670 = vmatpush1.bf16.msra.mxu1 %v5176_v42  ;;  %v5265_v41 = vld [vmem:[#allocation4 + $0x6a4] ss:$16 sps:$4 sm:$0xff]   ;;  %v5268_v42 = vld [vmem:[#allocation4 + $0x6ac] ss:$16 sps:$4 sm:$0xff]  }
  0xf6   :  { %3327 = vmatprep.subr.bf16.mxu0 %v5181_v43  ;;  %3671 = vmatprep.subr.bf16.mxu1 %v5184_v44  ;;  %v5263_v43 = vld [vmem:[#allocation4 + $0x6a0] ss:$16 sps:$4 sm:$0xff]   ;;  %v5266_v44 = vld [vmem:[#allocation4 + $0x6a8] ss:$16 sps:$4 sm:$0xff]  }
  0xf9   :  { %3328 = vmatpush1.bf16.msra.mxu0 %v5179_v45  ;;  %3672 = vmatpush1.bf16.msra.mxu1 %v5182_v46  ;;  %v5271_v45 = vld [vmem:[#allocation4 + $0x6c4] ss:$16 sps:$4 sm:$0xff]   ;;  %v5274_v46 = vld [vmem:[#allocation4 + $0x6cc] ss:$16 sps:$4 sm:$0xff]  }
  0xfa   :  { %3329 = vmatprep.subr.bf16.mxu0 %v5187_v47  ;;  %3673 = vmatprep.subr.bf16.mxu1 %v5190_v48  ;;  %v5269_v47 = vld [vmem:[#allocation4 + $0x6c0] ss:$16 sps:$4 sm:$0xff]   ;;  %v5272_v48 = vld [vmem:[#allocation4 + $0x6c8] ss:$16 sps:$4 sm:$0xff]  }
  0xfd   :  { %3330 = vmatpush1.bf16.msra.mxu0 %v5185_v49  ;;  %3674 = vmatpush1.bf16.msra.mxu1 %v5188_v50  ;;  %v5277_v49 = vld [vmem:[#allocation4 + $0x6e4] ss:$16 sps:$4 sm:$0xff]   ;;  %v5280_v50 = vld [vmem:[#allocation4 + $0x6ec] ss:$16 sps:$4 sm:$0xff]  }
  0xfe   :  { %3331 = vmatprep.subr.bf16.mxu0 %v5193_v51  ;;  %3675 = vmatprep.subr.bf16.mxu1 %v5196_v52  ;;  %v5275_v51 = vld [vmem:[#allocation4 + $0x6e0] ss:$16 sps:$4 sm:$0xff]   ;;  %v5278_v52 = vld [vmem:[#allocation4 + $0x6e8] ss:$16 sps:$4 sm:$0xff]  }
 0x101   :  { %3332 = vmatpush1.bf16.msra.mxu0 %v5191_v53  ;;  %3676 = vmatpush1.bf16.msra.mxu1 %v5194_v54  ;;  %v5283_v53 = vld [vmem:[#allocation4 + $0x704] ss:$16 sps:$4 sm:$0xff]   ;;  %v5286_v54 = vld [vmem:[#allocation4 + $0x70c] ss:$16 sps:$4 sm:$0xff]  }
 0x102   :  { %3333 = vmatprep.subr.bf16.mxu0 %v5199_v55  ;;  %3677 = vmatprep.subr.bf16.mxu1 %v5202_v56  ;;  %v5281_v55 = vld [vmem:[#allocation4 + $0x700] ss:$16 sps:$4 sm:$0xff]   ;;  %v5284_v56 = vld [vmem:[#allocation4 + $0x708] ss:$16 sps:$4 sm:$0xff]  }
 0x105   :  { %3334 = vmatpush1.bf16.msra.mxu0 %v5197_v57  ;;  %3678 = vmatpush1.bf16.msra.mxu1 %v5200_v58  ;;  %v5289_v57 = vld [vmem:[#allocation4 + $0x724] ss:$16 sps:$4 sm:$0xff]   ;;  %v5292_v58 = vld [vmem:[#allocation4 + $0x72c] ss:$16 sps:$4 sm:$0xff]  }
 0x106   :  { %3335 = vmatprep.subr.bf16.mxu0 %v5205_v59  ;;  %3679 = vmatprep.subr.bf16.mxu1 %v5208_v60  ;;  %v5287_v59 = vld [vmem:[#allocation4 + $0x720] ss:$16 sps:$4 sm:$0xff]   ;;  %v5290_v60 = vld [vmem:[#allocation4 + $0x728] ss:$16 sps:$4 sm:$0xff]  }
 0x109   :  { %3336 = vmatpush1.bf16.msra.mxu0 %v5203_v61  ;;  %3680 = vmatpush1.bf16.msra.mxu1 %v5206_v62  ;;  %v5295_v61 = vld [vmem:[#allocation4 + $0x744] ss:$16 sps:$4 sm:$0xff]   ;;  %v5298_v62 = vld [vmem:[#allocation4 + $0x74c] ss:$16 sps:$4 sm:$0xff]  }
 0x10a   :  { %3337 = vmatprep.subr.bf16.mxu0 %v5211_v63  ;;  %3681 = vmatprep.subr.bf16.mxu1 %v5214_v0  ;;  %v5293_v63 = vld [vmem:[#allocation4 + $0x740] ss:$16 sps:$4 sm:$0xff]   ;;  %v5296_v0 = vld [vmem:[#allocation4 + $0x748] ss:$16 sps:$4 sm:$0xff]  }
 0x10d   :  { %3338 = vmatpush1.bf16.msra.mxu0 %v5209_v1  ;;  %3682 = vmatpush1.bf16.msra.mxu1 %v5212_v2  ;;  %v5301_v1 = vld [vmem:[#allocation4 + $0x764] ss:$16 sps:$4 sm:$0xff]   ;;  %v5304_v2 = vld [vmem:[#allocation4 + $0x76c] ss:$16 sps:$4 sm:$0xff]  }
 0x10e   :  { %3339 = vmatprep.subr.bf16.mxu0 %v5217_v3  ;;  %3683 = vmatprep.subr.bf16.mxu1 %v5220_v4  ;;  %v5299_v3 = vld [vmem:[#allocation4 + $0x760] ss:$16 sps:$4 sm:$0xff]   ;;  %v5302_v4 = vld [vmem:[#allocation4 + $0x768] ss:$16 sps:$4 sm:$0xff]  }
 0x111   :  { %3340 = vmatpush1.bf16.msra.mxu0 %v5215_v5  ;;  %3684 = vmatpush1.bf16.msra.mxu1 %v5218_v6  ;;  %v5307_v5 = vld [vmem:[#allocation4 + $0x784] ss:$16 sps:$4 sm:$0xff]   ;;  %v5310_v6 = vld [vmem:[#allocation4 + $0x78c] ss:$16 sps:$4 sm:$0xff]  }
 0x112   :  { %3341 = vmatprep.subr.bf16.mxu0 %v5223_v7  ;;  %3685 = vmatprep.subr.bf16.mxu1 %v5226_v8  ;;  %v5305_v7 = vld [vmem:[#allocation4 + $0x780] ss:$16 sps:$4 sm:$0xff]   ;;  %v5308_v8 = vld [vmem:[#allocation4 + $0x788] ss:$16 sps:$4 sm:$0xff]  }
 0x115   :  { %3342 = vmatpush1.bf16.msra.mxu0 %v5221_v9  ;;  %3686 = vmatpush1.bf16.msra.mxu1 %v5224_v10  ;;  %v5313_v9 = vld [vmem:[#allocation4 + $0x7a4] ss:$16 sps:$4 sm:$0xff]   ;;  %v5316_v10 = vld [vmem:[#allocation4 + $0x7ac] ss:$16 sps:$4 sm:$0xff]  }
 0x116   :  { %3343 = vmatprep.subr.bf16.mxu0 %v5229_v11  ;;  %3687 = vmatprep.subr.bf16.mxu1 %v5232_v12  ;;  %v5311_v11 = vld [vmem:[#allocation4 + $0x7a0] ss:$16 sps:$4 sm:$0xff]   ;;  %v5314_v12 = vld [vmem:[#allocation4 + $0x7a8] ss:$16 sps:$4 sm:$0xff]  }
 0x119   :  { %3344 = vmatpush1.bf16.msra.mxu0 %v5227_v13  ;;  %3688 = vmatpush1.bf16.msra.mxu1 %v5230_v14  ;;  %v5319_v13 = vld [vmem:[#allocation4 + $0x7c4] ss:$16 sps:$4 sm:$0xff]   ;;  %v5322_v14 = vld [vmem:[#allocation4 + $0x7cc] ss:$16 sps:$4 sm:$0xff]  }
 0x11a   :  { %3356 = vmatprep.subr.bf16.mxu0 %v5235_v15  ;;  %3700 = vmatprep.subr.bf16.mxu1 %v5238_v18  ;;  %v5317_v15 = vld [vmem:[#allocation4 + $0x7c0] ss:$16 sps:$4 sm:$0xff]   ;;  %v5328_v18 = vld [vmem:[#allocation4 + $0x7ec] ss:$16 sps:$4 sm:$0xff]  }
 0x11c   :  { %3346 = vmatmul.mubr.bf16.vlgmr.msra.gmra.mrb[0].mxu0 %v121_v21  ;;  %3690 = vmatmul.mubr.bf16.vlgmr.msra.gmra.mrb[0].mxu1 %v121_v21  ;;  %v5331_v21 = vld [vmem:[#allocation4 + $0x804] ss:$16 sps:$4 sm:$0xff]  }
 0x11d   :  { %3357 = vmatpush1.bf16.msra.mxu0 %v5233_v19  ;;  %3701 = vmatpush1.bf16.msra.mxu1 %v5236_v20  ;;  %v5323_v19 = vld [vmem:[#allocation4 + $0x7e0] ss:$16 sps:$4 sm:$0xff]   ;;  %v5326_v20 = vld [vmem:[#allocation4 + $0x7e8] ss:$16 sps:$4 sm:$0xff]  }
 0x11e   :  { %3358 = vmatprep.subr.bf16.mxu0 %v5241_v24  ;;  %3702 = vmatprep.subr.bf16.mxu1 %v5244_v25  ;;  %v5334_v24 = vld [vmem:[#allocation4 + $0x80c] ss:$16 sps:$4 sm:$0xff]   ;;  %v5329_v25 = vld [vmem:[#allocation4 + $0x800] ss:$16 sps:$4 sm:$0xff]  }
 0x11f   :  { %3388 = vmatprep.mubr.bf16.mxu0 %v124_v26  ;;  %3732 = vmatprep.mubr.bf16.mxu1 %v124_v26  ;;  %v5332_v26 = vld [vmem:[#allocation4 + $0x808] ss:$16 sps:$4 sm:$0xff]  }
 0x121   :  { %3359 = vmatpush1.bf16.msra.mxu0 %v5239_v27  ;;  %3703 = vmatpush1.bf16.msra.mxu1 %v5242_v28  ;;  %v123_v27 = vpack.c.bf16 %v107_v23, %v91_v22  ;;  %v94_v28 = vld [vmem:[#allocation2 + $0x48] sm:$0xff]  ;;  %v5421_v23 = vld [vmem:[#allocation4 + $0x9e4] ss:$16 sps:$4 sm:$0xff]  }
 0x122   :  { %3360 = vmatprep.subr.bf16.mxu0 %v5247_v29  ;;  %3704 = vmatprep.subr.bf16.mxu1 %v5250_v30  ;;  %v110_v29 = vld [vmem:[#allocation2 + $0xc8] sm:$0xff]  ;;  %v5337_v30 = vld [vmem:[#allocation4 + $0x824] ss:$16 sps:$4 sm:$0xff]  }
 0x123   :  { %v5416_v22 = vld [vmem:[#allocation4 + $0x9c8] ss:$16 sps:$4 sm:$0xff]  }
 0x125   :  { %3361 = vmatpush1.bf16.msra.mxu0 %v5245_v31  ;;  %3705 = vmatpush1.bf16.msra.mxu1 %v5248_v32  ;;  %v5340_v31 = vld [vmem:[#allocation4 + $0x82c] ss:$16 sps:$4 sm:$0xff]   ;;  %v126_v32 = vpack.c.bf16 %v110_v29, %v94_v28  ;;  %v93_v29 = vld [vmem:[#allocation2 + $0x40] sm:$0xff] }
 0x126   :  { %3362 = vmatprep.subr.bf16.mxu0 %v5253_v33  ;;  %3706 = vmatprep.subr.bf16.mxu1 %v5256_v34  ;;  %v5335_v33 = vld [vmem:[#allocation4 + $0x820] ss:$16 sps:$4 sm:$0xff]   ;;  %v5338_v34 = vld [vmem:[#allocation4 + $0x828] ss:$16 sps:$4 sm:$0xff]   ;;  %v5430_v28 = vld [vmem:[#allocation4 + $0xa0c] ss:$16 sps:$4 sm:$0xff]  }
 0x129   :  { %3363 = vmatpush1.bf16.msra.mxu0 %v5251_v35  ;;  %3707 = vmatpush1.bf16.msra.mxu1 %v5254_v36  ;;  %v5343_v35 = vld [vmem:[#allocation4 + $0x844] ss:$16 sps:$4 sm:$0xff]   ;;  %v5346_v36 = vld [vmem:[#allocation4 + $0x84c] ss:$16 sps:$4 sm:$0xff]  }
 0x12a   :  { %3364 = vmatprep.subr.bf16.mxu0 %v5259_v37  ;;  %3708 = vmatprep.subr.bf16.mxu1 %v5262_v38  ;;  %v5341_v37 = vld [vmem:[#allocation4 + $0x840] ss:$16 sps:$4 sm:$0xff]   ;;  %v5344_v38 = vld [vmem:[#allocation4 + $0x848] ss:$16 sps:$4 sm:$0xff]  }
 0x12d   :  { %3365 = vmatpush1.bf16.msra.mxu0 %v5257_v39  ;;  %3709 = vmatpush1.bf16.msra.mxu1 %v5260_v40  ;;  %v5349_v39 = vld [vmem:[#allocation4 + $0x864] ss:$16 sps:$4 sm:$0xff]   ;;  %v5352_v40 = vld [vmem:[#allocation4 + $0x86c] ss:$16 sps:$4 sm:$0xff]  }
 0x12e   :  { %3366 = vmatprep.subr.bf16.mxu0 %v5265_v41  ;;  %3710 = vmatprep.subr.bf16.mxu1 %v5268_v42  ;;  %v5347_v41 = vld [vmem:[#allocation4 + $0x860] ss:$16 sps:$4 sm:$0xff]   ;;  %v5350_v42 = vld [vmem:[#allocation4 + $0x868] ss:$16 sps:$4 sm:$0xff]  }
 0x131   :  { %3367 = vmatpush1.bf16.msra.mxu0 %v5263_v43  ;;  %3711 = vmatpush1.bf16.msra.mxu1 %v5266_v44  ;;  %v5355_v43 = vld [vmem:[#allocation4 + $0x884] ss:$16 sps:$4 sm:$0xff]   ;;  %v5358_v44 = vld [vmem:[#allocation4 + $0x88c] ss:$16 sps:$4 sm:$0xff]  }
 0x132   :  { %3368 = vmatprep.subr.bf16.mxu0 %v5271_v45  ;;  %3712 = vmatprep.subr.bf16.mxu1 %v5274_v46  ;;  %v5353_v45 = vld [vmem:[#allocation4 + $0x880] ss:$16 sps:$4 sm:$0xff]   ;;  %v5356_v46 = vld [vmem:[#allocation4 + $0x888] ss:$16 sps:$4 sm:$0xff]  }
 0x135   :  { %3369 = vmatpush1.bf16.msra.mxu0 %v5269_v47  ;;  %3713 = vmatpush1.bf16.msra.mxu1 %v5272_v48  ;;  %v5361_v47 = vld [vmem:[#allocation4 + $0x8a4] ss:$16 sps:$4 sm:$0xff]   ;;  %v5364_v48 = vld [vmem:[#allocation4 + $0x8ac] ss:$16 sps:$4 sm:$0xff]  }
 0x136   :  { %3370 = vmatprep.subr.bf16.mxu0 %v5277_v49  ;;  %3714 = vmatprep.subr.bf16.mxu1 %v5280_v50  ;;  %v5359_v49 = vld [vmem:[#allocation4 + $0x8a0] ss:$16 sps:$4 sm:$0xff]   ;;  %v5362_v50 = vld [vmem:[#allocation4 + $0x8a8] ss:$16 sps:$4 sm:$0xff]  }
 0x139   :  { %3371 = vmatpush1.bf16.msra.mxu0 %v5275_v51  ;;  %3715 = vmatpush1.bf16.msra.mxu1 %v5278_v52  ;;  %v5367_v51 = vld [vmem:[#allocation4 + $0x8c4] ss:$16 sps:$4 sm:$0xff]   ;;  %v5370_v52 = vld [vmem:[#allocation4 + $0x8cc] ss:$16 sps:$4 sm:$0xff]  }
 0x13a   :  { %3372 = vmatprep.subr.bf16.mxu0 %v5283_v53  ;;  %3716 = vmatprep.subr.bf16.mxu1 %v5286_v54  ;;  %v5365_v53 = vld [vmem:[#allocation4 + $0x8c0] ss:$16 sps:$4 sm:$0xff]   ;;  %v5368_v54 = vld [vmem:[#allocation4 + $0x8c8] ss:$16 sps:$4 sm:$0xff]  }
 0x13d   :  { %3373 = vmatpush1.bf16.msra.mxu0 %v5281_v55  ;;  %3717 = vmatpush1.bf16.msra.mxu1 %v5284_v56  ;;  %v5373_v55 = vld [vmem:[#allocation4 + $0x8e4] ss:$16 sps:$4 sm:$0xff]   ;;  %v5376_v56 = vld [vmem:[#allocation4 + $0x8ec] ss:$16 sps:$4 sm:$0xff]  }
 0x13e   :  { %3374 = vmatprep.subr.bf16.mxu0 %v5289_v57  ;;  %3718 = vmatprep.subr.bf16.mxu1 %v5292_v58  ;;  %v5371_v57 = vld [vmem:[#allocation4 + $0x8e0] ss:$16 sps:$4 sm:$0xff]   ;;  %v5374_v58 = vld [vmem:[#allocation4 + $0x8e8] ss:$16 sps:$4 sm:$0xff]  }
 0x141   :  { %3375 = vmatpush1.bf16.msra.mxu0 %v5287_v59  ;;  %3719 = vmatpush1.bf16.msra.mxu1 %v5290_v60  ;;  %v5379_v59 = vld [vmem:[#allocation4 + $0x904] ss:$16 sps:$4 sm:$0xff]   ;;  %v5382_v60 = vld [vmem:[#allocation4 + $0x90c] ss:$16 sps:$4 sm:$0xff]  }
 0x142   :  { %3376 = vmatprep.subr.bf16.mxu0 %v5295_v61  ;;  %3720 = vmatprep.subr.bf16.mxu1 %v5298_v62  ;;  %v5377_v61 = vld [vmem:[#allocation4 + $0x900] ss:$16 sps:$4 sm:$0xff]   ;;  %v5380_v62 = vld [vmem:[#allocation4 + $0x908] ss:$16 sps:$4 sm:$0xff]  }
 0x145   :  { %3377 = vmatpush1.bf16.msra.mxu0 %v5293_v63  ;;  %3721 = vmatpush1.bf16.msra.mxu1 %v5296_v0  ;;  %v5385_v63 = vld [vmem:[#allocation4 + $0x924] ss:$16 sps:$4 sm:$0xff]   ;;  %v5388_v0 = vld [vmem:[#allocation4 + $0x92c] ss:$16 sps:$4 sm:$0xff]  }
 0x146   :  { %3378 = vmatprep.subr.bf16.mxu0 %v5301_v1  ;;  %3722 = vmatprep.subr.bf16.mxu1 %v5304_v2  ;;  %v5383_v1 = vld [vmem:[#allocation4 + $0x920] ss:$16 sps:$4 sm:$0xff]   ;;  %v5386_v2 = vld [vmem:[#allocation4 + $0x928] ss:$16 sps:$4 sm:$0xff]  }
 0x149   :  { %3379 = vmatpush1.bf16.msra.mxu0 %v5299_v3  ;;  %3723 = vmatpush1.bf16.msra.mxu1 %v5302_v4  ;;  %v5391_v3 = vld [vmem:[#allocation4 + $0x944] ss:$16 sps:$4 sm:$0xff]   ;;  %v5394_v4 = vld [vmem:[#allocation4 + $0x94c] ss:$16 sps:$4 sm:$0xff]  }
 0x14a   :  { %3380 = vmatprep.subr.bf16.mxu0 %v5307_v5  ;;  %3724 = vmatprep.subr.bf16.mxu1 %v5310_v6  ;;  %v5389_v5 = vld [vmem:[#allocation4 + $0x940] ss:$16 sps:$4 sm:$0xff]   ;;  %v5392_v6 = vld [vmem:[#allocation4 + $0x948] ss:$16 sps:$4 sm:$0xff]  }
 0x14d   :  { %3381 = vmatpush1.bf16.msra.mxu0 %v5305_v7  ;;  %3725 = vmatpush1.bf16.msra.mxu1 %v5308_v8  ;;  %v5397_v7 = vld [vmem:[#allocation4 + $0x964] ss:$16 sps:$4 sm:$0xff]   ;;  %v5400_v8 = vld [vmem:[#allocation4 + $0x96c] ss:$16 sps:$4 sm:$0xff]  }
 0x14e   :  { %3382 = vmatprep.subr.bf16.mxu0 %v5313_v9  ;;  %3726 = vmatprep.subr.bf16.mxu1 %v5316_v10  ;;  %v5395_v9 = vld [vmem:[#allocation4 + $0x960] ss:$16 sps:$4 sm:$0xff]   ;;  %v5398_v10 = vld [vmem:[#allocation4 + $0x968] ss:$16 sps:$4 sm:$0xff]  }
 0x151   :  { %3383 = vmatpush1.bf16.msra.mxu0 %v5311_v11  ;;  %3727 = vmatpush1.bf16.msra.mxu1 %v5314_v12  ;;  %v5403_v11 = vld [vmem:[#allocation4 + $0x984] ss:$16 sps:$4 sm:$0xff]   ;;  %v5406_v12 = vld [vmem:[#allocation4 + $0x98c] ss:$16 sps:$4 sm:$0xff]  }
 0x152   :  { %3384 = vmatprep.subr.bf16.mxu0 %v5319_v13  ;;  %3728 = vmatprep.subr.bf16.mxu1 %v5322_v14  ;;  %v5401_v13 = vld [vmem:[#allocation4 + $0x980] ss:$16 sps:$4 sm:$0xff]   ;;  %v5404_v14 = vld [vmem:[#allocation4 + $0x988] ss:$16 sps:$4 sm:$0xff]  }
 0x155   :  { %3385 = vmatpush1.bf16.msra.mxu0 %v5317_v15  ;;  %3729 = vmatpush1.bf16.msra.mxu1 %v5320_v16  ;;  %v5409_v15 = vld [vmem:[#allocation4 + $0x9a4] ss:$16 sps:$4 sm:$0xff]   ;;  %v5412_v16 = vld [vmem:[#allocation4 + $0x9ac] ss:$16 sps:$4 sm:$0xff]  }
 0x156   :  { %3386 = vmatprep.subr.bf16.mxu0 %v5325_v17  ;;  %3730 = vmatprep.subr.bf16.mxu1 %v5328_v18  ;;  %v5407_v17 = vld [vmem:[#allocation4 + $0x9a0] ss:$16 sps:$4 sm:$0xff]   ;;  %v5410_v18 = vld [vmem:[#allocation4 + $0x9a8] ss:$16 sps:$4 sm:$0xff]  }
 0x159   :  { %3387 = vmatpush1.bf16.msra.mxu0 %v5323_v19  ;;  %3731 = vmatpush1.bf16.msra.mxu1 %v5326_v20  ;;  %v5415_v19 = vld [vmem:[#allocation4 + $0x9c4] ss:$16 sps:$4 sm:$0xff]   ;;  %v5418_v20 = vld [vmem:[#allocation4 + $0x9cc] ss:$16 sps:$4 sm:$0xff]  }
 0x15a   :  { %3399 = vmatprep.subr.bf16.mxu0 %v5331_v21  ;;  %3743 = vmatprep.subr.bf16.mxu1 %v5334_v24  ;;  %v5413_v21 = vld [vmem:[#allocation4 + $0x9c0] ss:$16 sps:$4 sm:$0xff]   ;;  %v5424_v24 = vld [vmem:[#allocation4 + $0x9ec] ss:$16 sps:$4 sm:$0xff]  }
 0x15c   :  { %3389 = vmatmul.mubr.bf16.vlgmr.msra.gmra.mrb[0].mxu0 %v123_v27  ;;  %3733 = vmatmul.mubr.bf16.vlgmr.msra.gmra.mrb[0].mxu1 %v123_v27  ;;  %v5427_v27 = vld [vmem:[#allocation4 + $0xa04] ss:$16 sps:$4 sm:$0xff]  }
 0x15d   :  { %3400 = vmatpush1.bf16.msra.mxu0 %v5329_v25  ;;  %3744 = vmatpush1.bf16.msra.mxu1 %v5332_v26  ;;  %v5419_v25 = vld [vmem:[#allocation4 + $0x9e0] ss:$16 sps:$4 sm:$0xff]   ;;  %v5422_v26 = vld [vmem:[#allocation4 + $0x9e8] ss:$16 sps:$4 sm:$0xff]  }
 0x15e   :  { %3401 = vmatprep.subr.bf16.mxu0 %v5337_v30  ;;  %3745 = vmatprep.subr.bf16.mxu1 %v5340_v31  ;;  %v109_v30 = vld [vmem:[#allocation2 + $0xc0] sm:$0xff]  ;;  %v96_v31 = vld [vmem:[#allocation2 + $0x58] sm:$0xff] }
 0x15f   :  { %3431 = vmatprep.mubr.bf16.mxu0 %v126_v32  ;;  %3775 = vmatprep.mubr.bf16.mxu1 %v126_v32  ;;  %v112_v32 = vld [vmem:[#allocation2 + $0xd8] sm:$0xff] }
 0x161   :  { %3402 = vmatpush1.bf16.msra.mxu0 %v5335_v33  ;;  %3746 = vmatpush1.bf16.msra.mxu1 %v5338_v34  ;;  %v125_v33 = vpack.c.bf16 %v109_v30, %v93_v29  ;;  %v5425_v34 = vld [vmem:[#allocation4 + $0xa00] ss:$16 sps:$4 sm:$0xff]   ;;  %v5517_v29 = vld [vmem:[#allocation4 + $0xbe4] ss:$16 sps:$4 sm:$0xff]   ;;  %v5520_v30 = vld [vmem:[#allocation4 + $0xbec] ss:$16 sps:$4 sm:$0xff]  }
 0x162   :  { %3403 = vmatprep.subr.bf16.mxu0 %v5343_v35  ;;  %3747 = vmatprep.subr.bf16.mxu1 %v5346_v36  ;;  %v5428_v35 = vld [vmem:[#allocation4 + $0xa08] ss:$16 sps:$4 sm:$0xff]   ;;  %v5433_v36 = vld [vmem:[#allocation4 + $0xa24] ss:$16 sps:$4 sm:$0xff]  }
 0x165   :  { %3404 = vmatpush1.bf16.msra.mxu0 %v5341_v37  ;;  %3748 = vmatpush1.bf16.msra.mxu1 %v5344_v38  ;;  %v5436_v37 = vld [vmem:[#allocation4 + $0xa2c] ss:$16 sps:$4 sm:$0xff]   ;;  %v128_v38 = vpack.c.bf16 %v112_v32, %v96_v31  ;;  %v5515_v31 = vld [vmem:[#allocation4 + $0xbe0] ss:$16 sps:$4 sm:$0xff]   ;;  %v5518_v32 = vld [vmem:[#allocation4 + $0xbe8] ss:$16 sps:$4 sm:$0xff]  }
 0x166   :  { %3405 = vmatprep.subr.bf16.mxu0 %v5349_v39  ;;  %3749 = vmatprep.subr.bf16.mxu1 %v5352_v40  ;;  %v5431_v39 = vld [vmem:[#allocation4 + $0xa20] ss:$16 sps:$4 sm:$0xff]   ;;  %v5434_v40 = vld [vmem:[#allocation4 + $0xa28] ss:$16 sps:$4 sm:$0xff]  }
 0x169   :  { %3406 = vmatpush1.bf16.msra.mxu0 %v5347_v41  ;;  %3750 = vmatpush1.bf16.msra.mxu1 %v5350_v42  ;;  %v5439_v41 = vld [vmem:[#allocation4 + $0xa44] ss:$16 sps:$4 sm:$0xff]   ;;  %v5442_v42 = vld [vmem:[#allocation4 + $0xa4c] ss:$16 sps:$4 sm:$0xff]  }
 0x16a   :  { %3407 = vmatprep.subr.bf16.mxu0 %v5355_v43  ;;  %3751 = vmatprep.subr.bf16.mxu1 %v5358_v44  ;;  %v5437_v43 = vld [vmem:[#allocation4 + $0xa40] ss:$16 sps:$4 sm:$0xff]   ;;  %v5440_v44 = vld [vmem:[#allocation4 + $0xa48] ss:$16 sps:$4 sm:$0xff]  }
 0x16d   :  { %3408 = vmatpush1.bf16.msra.mxu0 %v5353_v45  ;;  %3752 = vmatpush1.bf16.msra.mxu1 %v5356_v46  ;;  %v5445_v45 = vld [vmem:[#allocation4 + $0xa64] ss:$16 sps:$4 sm:$0xff]   ;;  %v5448_v46 = vld [vmem:[#allocation4 + $0xa6c] ss:$16 sps:$4 sm:$0xff]  }
 0x16e   :  { %3409 = vmatprep.subr.bf16.mxu0 %v5361_v47  ;;  %3753 = vmatprep.subr.bf16.mxu1 %v5364_v48  ;;  %v5443_v47 = vld [vmem:[#allocation4 + $0xa60] ss:$16 sps:$4 sm:$0xff]   ;;  %v5446_v48 = vld [vmem:[#allocation4 + $0xa68] ss:$16 sps:$4 sm:$0xff]  }
 0x171   :  { %3410 = vmatpush1.bf16.msra.mxu0 %v5359_v49  ;;  %3754 = vmatpush1.bf16.msra.mxu1 %v5362_v50  ;;  %v5451_v49 = vld [vmem:[#allocation4 + $0xa84] ss:$16 sps:$4 sm:$0xff]   ;;  %v5454_v50 = vld [vmem:[#allocation4 + $0xa8c] ss:$16 sps:$4 sm:$0xff]  }
 0x172   :  { %3411 = vmatprep.subr.bf16.mxu0 %v5367_v51  ;;  %3755 = vmatprep.subr.bf16.mxu1 %v5370_v52  ;;  %v5449_v51 = vld [vmem:[#allocation4 + $0xa80] ss:$16 sps:$4 sm:$0xff]   ;;  %v5452_v52 = vld [vmem:[#allocation4 + $0xa88] ss:$16 sps:$4 sm:$0xff]  }
 0x175   :  { %3412 = vmatpush1.bf16.msra.mxu0 %v5365_v53  ;;  %3756 = vmatpush1.bf16.msra.mxu1 %v5368_v54  ;;  %v5457_v53 = vld [vmem:[#allocation4 + $0xaa4] ss:$16 sps:$4 sm:$0xff]   ;;  %v5460_v54 = vld [vmem:[#allocation4 + $0xaac] ss:$16 sps:$4 sm:$0xff]  }
 0x176   :  { %3413 = vmatprep.subr.bf16.mxu0 %v5373_v55  ;;  %3757 = vmatprep.subr.bf16.mxu1 %v5376_v56  ;;  %v5455_v55 = vld [vmem:[#allocation4 + $0xaa0] ss:$16 sps:$4 sm:$0xff]   ;;  %v5458_v56 = vld [vmem:[#allocation4 + $0xaa8] ss:$16 sps:$4 sm:$0xff]  }
 0x179   :  { %3414 = vmatpush1.bf16.msra.mxu0 %v5371_v57  ;;  %3758 = vmatpush1.bf16.msra.mxu1 %v5374_v58  ;;  %v5463_v57 = vld [vmem:[#allocation4 + $0xac4] ss:$16 sps:$4 sm:$0xff]   ;;  %v5466_v58 = vld [vmem:[#allocation4 + $0xacc] ss:$16 sps:$4 sm:$0xff]  }
 0x17a   :  { %3415 = vmatprep.subr.bf16.mxu0 %v5379_v59  ;;  %3759 = vmatprep.subr.bf16.mxu1 %v5382_v60  ;;  %v5461_v59 = vld [vmem:[#allocation4 + $0xac0] ss:$16 sps:$4 sm:$0xff]   ;;  %v5464_v60 = vld [vmem:[#allocation4 + $0xac8] ss:$16 sps:$4 sm:$0xff]  }
 0x17d   :  { %3416 = vmatpush1.bf16.msra.mxu0 %v5377_v61  ;;  %3760 = vmatpush1.bf16.msra.mxu1 %v5380_v62  ;;  %v5469_v61 = vld [vmem:[#allocation4 + $0xae4] ss:$16 sps:$4 sm:$0xff]   ;;  %v5472_v62 = vld [vmem:[#allocation4 + $0xaec] ss:$16 sps:$4 sm:$0xff]  }
 0x17e   :  { %3417 = vmatprep.subr.bf16.mxu0 %v5385_v63  ;;  %3761 = vmatprep.subr.bf16.mxu1 %v5388_v0  ;;  %v5467_v63 = vld [vmem:[#allocation4 + $0xae0] ss:$16 sps:$4 sm:$0xff]   ;;  %v5470_v0 = vld [vmem:[#allocation4 + $0xae8] ss:$16 sps:$4 sm:$0xff]  }
 0x181   :  { %3418 = vmatpush1.bf16.msra.mxu0 %v5383_v1  ;;  %3762 = vmatpush1.bf16.msra.mxu1 %v5386_v2  ;;  %v5475_v1 = vld [vmem:[#allocation4 + $0xb04] ss:$16 sps:$4 sm:$0xff]   ;;  %v5478_v2 = vld [vmem:[#allocation4 + $0xb0c] ss:$16 sps:$4 sm:$0xff]  }
 0x182   :  { %3419 = vmatprep.subr.bf16.mxu0 %v5391_v3  ;;  %3763 = vmatprep.subr.bf16.mxu1 %v5394_v4  ;;  %v5473_v3 = vld [vmem:[#allocation4 + $0xb00] ss:$16 sps:$4 sm:$0xff]   ;;  %v5476_v4 = vld [vmem:[#allocation4 + $0xb08] ss:$16 sps:$4 sm:$0xff]  }
 0x185   :  { %3420 = vmatpush1.bf16.msra.mxu0 %v5389_v5  ;;  %3764 = vmatpush1.bf16.msra.mxu1 %v5392_v6  ;;  %v5481_v5 = vld [vmem:[#allocation4 + $0xb24] ss:$16 sps:$4 sm:$0xff]   ;;  %v5484_v6 = vld [vmem:[#allocation4 + $0xb2c] ss:$16 sps:$4 sm:$0xff]  }
 0x186   :  { %3421 = vmatprep.subr.bf16.mxu0 %v5397_v7  ;;  %3765 = vmatprep.subr.bf16.mxu1 %v5400_v8  ;;  %v5479_v7 = vld [vmem:[#allocation4 + $0xb20] ss:$16 sps:$4 sm:$0xff]   ;;  %v5482_v8 = vld [vmem:[#allocation4 + $0xb28] ss:$16 sps:$4 sm:$0xff]  }
 0x189   :  { %3422 = vmatpush1.bf16.msra.mxu0 %v5395_v9  ;;  %3766 = vmatpush1.bf16.msra.mxu1 %v5398_v10  ;;  %v5487_v9 = vld [vmem:[#allocation4 + $0xb44] ss:$16 sps:$4 sm:$0xff]   ;;  %v5490_v10 = vld [vmem:[#allocation4 + $0xb4c] ss:$16 sps:$4 sm:$0xff]  }
 0x18a   :  { %3423 = vmatprep.subr.bf16.mxu0 %v5403_v11  ;;  %3767 = vmatprep.subr.bf16.mxu1 %v5406_v12  ;;  %v5485_v11 = vld [vmem:[#allocation4 + $0xb40] ss:$16 sps:$4 sm:$0xff]   ;;  %v5488_v12 = vld [vmem:[#allocation4 + $0xb48] ss:$16 sps:$4 sm:$0xff]  }
 0x18d   :  { %3424 = vmatpush1.bf16.msra.mxu0 %v5401_v13  ;;  %3768 = vmatpush1.bf16.msra.mxu1 %v5404_v14  ;;  %v5493_v13 = vld [vmem:[#allocation4 + $0xb64] ss:$16 sps:$4 sm:$0xff]   ;;  %v5496_v14 = vld [vmem:[#allocation4 + $0xb6c] ss:$16 sps:$4 sm:$0xff]  }
 0x18e   :  { %3425 = vmatprep.subr.bf16.mxu0 %v5409_v15  ;;  %3769 = vmatprep.subr.bf16.mxu1 %v5412_v16  ;;  %v5491_v15 = vld [vmem:[#allocation4 + $0xb60] ss:$16 sps:$4 sm:$0xff]   ;;  %v5494_v16 = vld [vmem:[#allocation4 + $0xb68] ss:$16 sps:$4 sm:$0xff]  }
 0x191   :  { %3426 = vmatpush1.bf16.msra.mxu0 %v5407_v17  ;;  %3770 = vmatpush1.bf16.msra.mxu1 %v5410_v18  ;;  %v5499_v17 = vld [vmem:[#allocation4 + $0xb84] ss:$16 sps:$4 sm:$0xff]   ;;  %v5502_v18 = vld [vmem:[#allocation4 + $0xb8c] ss:$16 sps:$4 sm:$0xff]  }
 0x192   :  { %3427 = vmatprep.subr.bf16.mxu0 %v5415_v19  ;;  %3771 = vmatprep.subr.bf16.mxu1 %v5418_v20  ;;  %v5497_v19 = vld [vmem:[#allocation4 + $0xb80] ss:$16 sps:$4 sm:$0xff]   ;;  %v5500_v20 = vld [vmem:[#allocation4 + $0xb88] ss:$16 sps:$4 sm:$0xff]  }
 0x195   :  { %3428 = vmatpush1.bf16.msra.mxu0 %v5413_v21  ;;  %3772 = vmatpush1.bf16.msra.mxu1 %v5416_v22  ;;  %v5505_v21 = vld [vmem:[#allocation4 + $0xba4] ss:$16 sps:$4 sm:$0xff]   ;;  %v5508_v22 = vld [vmem:[#allocation4 + $0xbac] ss:$16 sps:$4 sm:$0xff]  }
 0x196   :  { %3429 = vmatprep.subr.bf16.mxu0 %v5421_v23  ;;  %3773 = vmatprep.subr.bf16.mxu1 %v5424_v24  ;;  %v5503_v23 = vld [vmem:[#allocation4 + $0xba0] ss:$16 sps:$4 sm:$0xff]   ;;  %v5506_v24 = vld [vmem:[#allocation4 + $0xba8] ss:$16 sps:$4 sm:$0xff]  }
 0x199   :  { %3430 = vmatpush1.bf16.msra.mxu0 %v5419_v25  ;;  %3774 = vmatpush1.bf16.msra.mxu1 %v5422_v26  ;;  %v5511_v25 = vld [vmem:[#allocation4 + $0xbc4] ss:$16 sps:$4 sm:$0xff]   ;;  %v5514_v26 = vld [vmem:[#allocation4 + $0xbcc] ss:$16 sps:$4 sm:$0xff]  }
 0x19a   :  { %3442 = vmatprep.subr.bf16.mxu0 %v5427_v27  ;;  %3786 = vmatprep.subr.bf16.mxu1 %v5430_v28  ;;  %v5509_v27 = vld [vmem:[#allocation4 + $0xbc0] ss:$16 sps:$4 sm:$0xff]   ;;  %v5512_v28 = vld [vmem:[#allocation4 + $0xbc8] ss:$16 sps:$4 sm:$0xff]  }
 0x19c   :  { %3432 = vmatmul.mubr.bf16.vlgmr.msra.gmra.mrb[0].mxu0 %v125_v33  ;;  %3776 = vmatmul.mubr.bf16.vlgmr.msra.gmra.mrb[0].mxu1 %v125_v33  ;;  %v95_v33 = vld [vmem:[#allocation2 + $0x50] sm:$0xff] }
 0x19d   :  { %3443 = vmatpush1.bf16.msra.mxu0 %v5425_v34  ;;  %3787 = vmatpush1.bf16.msra.mxu1 %v5428_v35  ;;  %v111_v34 = vld [vmem:[#allocation2 + $0xd0] sm:$0xff] }
 0x19e   :  { %3444 = vmatprep.subr.bf16.mxu0 %v5433_v36  ;;  %3788 = vmatprep.subr.bf16.mxu1 %v5436_v37  ;;  %v5523_v35 = vld [vmem:[#allocation4 + $0xc04] ss:$16 sps:$4 sm:$0xff]   ;;  %v5526_v36 = vld [vmem:[#allocation4 + $0xc0c] ss:$16 sps:$4 sm:$0xff]   ;;  %v127_v37 = vpack.c.bf16 %v111_v34, %v95_v33  ;;  %v5605_v33 = vld [vmem:[#allocation4 + $0xdc0] ss:$16 sps:$4 sm:$0xff]  }
 0x19f   :  { %3474 = vmatprep.mubr.bf16.mxu0 %v128_v38  ;;  %3818 = vmatprep.mubr.bf16.mxu1 %v128_v38  ;;  %v98_v38 = vld [vmem:[#allocation2 + $0x68] sm:$0xff] }
 0x1a0   :  { %v5608_v34 = vld [vmem:[#allocation4 + $0xdc8] ss:$16 sps:$4 sm:$0xff]  }
 0x1a1   :  { %3445 = vmatpush1.bf16.msra.mxu0 %v5431_v39  ;;  %3789 = vmatpush1.bf16.msra.mxu1 %v5434_v40  ;;  %v114_v39 = vld [vmem:[#allocation2 + $0xe8] sm:$0xff]  ;;  %v5521_v40 = vld [vmem:[#allocation4 + $0xc00] ss:$16 sps:$4 sm:$0xff]  }
 0x1a2   :  { %3446 = vmatprep.subr.bf16.mxu0 %v5439_v41  ;;  %3790 = vmatprep.subr.bf16.mxu1 %v5442_v42  ;;  %v5524_v41 = vld [vmem:[#allocation4 + $0xc08] ss:$16 sps:$4 sm:$0xff]   ;;  %v5529_v42 = vld [vmem:[#allocation4 + $0xc24] ss:$16 sps:$4 sm:$0xff]  }
 0x1a5   :  { %3447 = vmatpush1.bf16.msra.mxu0 %v5437_v43  ;;  %3791 = vmatpush1.bf16.msra.mxu1 %v5440_v44  ;;  %v5532_v43 = vld [vmem:[#allocation4 + $0xc2c] ss:$16 sps:$4 sm:$0xff]   ;;  %v130_v44 = vpack.c.bf16 %v114_v39, %v98_v38  ;;  %v5614_v38 = vld [vmem:[#allocation4 + $0xde8] ss:$16 sps:$4 sm:$0xff]   ;;  %v97_v39 = vld [vmem:[#allocation2 + $0x60] sm:$0xff] }
 0x1a6   :  { %3448 = vmatprep.subr.bf16.mxu0 %v5445_v45  ;;  %3792 = vmatprep.subr.bf16.mxu1 %v5448_v46  ;;  %v5527_v45 = vld [vmem:[#allocation4 + $0xc20] ss:$16 sps:$4 sm:$0xff]   ;;  %v5530_v46 = vld [vmem:[#allocation4 + $0xc28] ss:$16 sps:$4 sm:$0xff]  }
 0x1a9   :  { %3449 = vmatpush1.bf16.msra.mxu0 %v5443_v47  ;;  %3793 = vmatpush1.bf16.msra.mxu1 %v5446_v48  ;;  %v5535_v47 = vld [vmem:[#allocation4 + $0xc44] ss:$16 sps:$4 sm:$0xff]   ;;  %v5538_v48 = vld [vmem:[#allocation4 + $0xc4c] ss:$16 sps:$4 sm:$0xff]  }
 0x1aa   :  { %3450 = vmatprep.subr.bf16.mxu0 %v5451_v49  ;;  %3794 = vmatprep.subr.bf16.mxu1 %v5454_v50  ;;  %v5533_v49 = vld [vmem:[#allocation4 + $0xc40] ss:$16 sps:$4 sm:$0xff]   ;;  %v5536_v50 = vld [vmem:[#allocation4 + $0xc48] ss:$16 sps:$4 sm:$0xff]  }
 0x1ad   :  { %3451 = vmatpush1.bf16.msra.mxu0 %v5449_v51  ;;  %3795 = vmatpush1.bf16.msra.mxu1 %v5452_v52  ;;  %v5541_v51 = vld [vmem:[#allocation4 + $0xc64] ss:$16 sps:$4 sm:$0xff]   ;;  %v5544_v52 = vld [vmem:[#allocation4 + $0xc6c] ss:$16 sps:$4 sm:$0xff]  }
 0x1ae   :  { %3452 = vmatprep.subr.bf16.mxu0 %v5457_v53  ;;  %3796 = vmatprep.subr.bf16.mxu1 %v5460_v54  ;;  %v5539_v53 = vld [vmem:[#allocation4 + $0xc60] ss:$16 sps:$4 sm:$0xff]   ;;  %v5542_v54 = vld [vmem:[#allocation4 + $0xc68] ss:$16 sps:$4 sm:$0xff]  }
 0x1b1   :  { %3453 = vmatpush1.bf16.msra.mxu0 %v5455_v55  ;;  %3797 = vmatpush1.bf16.msra.mxu1 %v5458_v56  ;;  %v5547_v55 = vld [vmem:[#allocation4 + $0xc84] ss:$16 sps:$4 sm:$0xff]   ;;  %v5550_v56 = vld [vmem:[#allocation4 + $0xc8c] ss:$16 sps:$4 sm:$0xff]  }
 0x1b2   :  { %3454 = vmatprep.subr.bf16.mxu0 %v5463_v57  ;;  %3798 = vmatprep.subr.bf16.mxu1 %v5466_v58  ;;  %v5545_v57 = vld [vmem:[#allocation4 + $0xc80] ss:$16 sps:$4 sm:$0xff]   ;;  %v5548_v58 = vld [vmem:[#allocation4 + $0xc88] ss:$16 sps:$4 sm:$0xff]  }
 0x1b5   :  { %3455 = vmatpush1.bf16.msra.mxu0 %v5461_v59  ;;  %3799 = vmatpush1.bf16.msra.mxu1 %v5464_v60  ;;  %v5553_v59 = vld [vmem:[#allocation4 + $0xca4] ss:$16 sps:$4 sm:$0xff]   ;;  %v5556_v60 = vld [vmem:[#allocation4 + $0xcac] ss:$16 sps:$4 sm:$0xff]  }
 0x1b6   :  { %3456 = vmatprep.subr.bf16.mxu0 %v5469_v61  ;;  %3800 = vmatprep.subr.bf16.mxu1 %v5472_v62  ;;  %v5551_v61 = vld [vmem:[#allocation4 + $0xca0] ss:$16 sps:$4 sm:$0xff]   ;;  %v5554_v62 = vld [vmem:[#allocation4 + $0xca8] ss:$16 sps:$4 sm:$0xff]  }
 0x1b9   :  { %3457 = vmatpush1.bf16.msra.mxu0 %v5467_v63  ;;  %3801 = vmatpush1.bf16.msra.mxu1 %v5470_v0  ;;  %v5559_v63 = vld [vmem:[#allocation4 + $0xcc4] ss:$16 sps:$4 sm:$0xff]   ;;  %v5562_v0 = vld [vmem:[#allocation4 + $0xccc] ss:$16 sps:$4 sm:$0xff]  }
 0x1ba   :  { %3458 = vmatprep.subr.bf16.mxu0 %v5475_v1  ;;  %3802 = vmatprep.subr.bf16.mxu1 %v5478_v2  ;;  %v5557_v1 = vld [vmem:[#allocation4 + $0xcc0] ss:$16 sps:$4 sm:$0xff]   ;;  %v5560_v2 = vld [vmem:[#allocation4 + $0xcc8] ss:$16 sps:$4 sm:$0xff]  }
 0x1bd   :  { %3459 = vmatpush1.bf16.msra.mxu0 %v5473_v3  ;;  %3803 = vmatpush1.bf16.msra.mxu1 %v5476_v4  ;;  %v5565_v3 = vld [vmem:[#allocation4 + $0xce4] ss:$16 sps:$4 sm:$0xff]   ;;  %v5568_v4 = vld [vmem:[#allocation4 + $0xcec] ss:$16 sps:$4 sm:$0xff]  }
 0x1be   :  { %3460 = vmatprep.subr.bf16.mxu0 %v5481_v5  ;;  %3804 = vmatprep.subr.bf16.mxu1 %v5484_v6  ;;  %v5563_v5 = vld [vmem:[#allocation4 + $0xce0] ss:$16 sps:$4 sm:$0xff]   ;;  %v5566_v6 = vld [vmem:[#allocation4 + $0xce8] ss:$16 sps:$4 sm:$0xff]  }
 0x1c1   :  { %3461 = vmatpush1.bf16.msra.mxu0 %v5479_v7  ;;  %3805 = vmatpush1.bf16.msra.mxu1 %v5482_v8  ;;  %v5571_v7 = vld [vmem:[#allocation4 + $0xd04] ss:$16 sps:$4 sm:$0xff]   ;;  %v5574_v8 = vld [vmem:[#allocation4 + $0xd0c] ss:$16 sps:$4 sm:$0xff]  }
 0x1c2   :  { %3462 = vmatprep.subr.bf16.mxu0 %v5487_v9  ;;  %3806 = vmatprep.subr.bf16.mxu1 %v5490_v10  ;;  %v5569_v9 = vld [vmem:[#allocation4 + $0xd00] ss:$16 sps:$4 sm:$0xff]   ;;  %v5572_v10 = vld [vmem:[#allocation4 + $0xd08] ss:$16 sps:$4 sm:$0xff]  }
 0x1c5   :  { %3463 = vmatpush1.bf16.msra.mxu0 %v5485_v11  ;;  %3807 = vmatpush1.bf16.msra.mxu1 %v5488_v12  ;;  %v5577_v11 = vld [vmem:[#allocation4 + $0xd24] ss:$16 sps:$4 sm:$0xff]   ;;  %v5580_v12 = vld [vmem:[#allocation4 + $0xd2c] ss:$16 sps:$4 sm:$0xff]  }
 0x1c6   :  { %3464 = vmatprep.subr.bf16.mxu0 %v5493_v13  ;;  %3808 = vmatprep.subr.bf16.mxu1 %v5496_v14  ;;  %v5575_v13 = vld [vmem:[#allocation4 + $0xd20] ss:$16 sps:$4 sm:$0xff]   ;;  %v5578_v14 = vld [vmem:[#allocation4 + $0xd28] ss:$16 sps:$4 sm:$0xff]  }
 0x1c9   :  { %3465 = vmatpush1.bf16.msra.mxu0 %v5491_v15  ;;  %3809 = vmatpush1.bf16.msra.mxu1 %v5494_v16  ;;  %v5583_v15 = vld [vmem:[#allocation4 + $0xd44] ss:$16 sps:$4 sm:$0xff]   ;;  %v5586_v16 = vld [vmem:[#allocation4 + $0xd4c] ss:$16 sps:$4 sm:$0xff]  }
 0x1ca   :  { %3466 = vmatprep.subr.bf16.mxu0 %v5499_v17  ;;  %3810 = vmatprep.subr.bf16.mxu1 %v5502_v18  ;;  %v5581_v17 = vld [vmem:[#allocation4 + $0xd40] ss:$16 sps:$4 sm:$0xff]   ;;  %v5584_v18 = vld [vmem:[#allocation4 + $0xd48] ss:$16 sps:$4 sm:$0xff]  }
 0x1cd   :  { %3467 = vmatpush1.bf16.msra.mxu0 %v5497_v19  ;;  %3811 = vmatpush1.bf16.msra.mxu1 %v5500_v20  ;;  %v5589_v19 = vld [vmem:[#allocation4 + $0xd64] ss:$16 sps:$4 sm:$0xff]   ;;  %v5592_v20 = vld [vmem:[#allocation4 + $0xd6c] ss:$16 sps:$4 sm:$0xff]  }
 0x1ce   :  { %3468 = vmatprep.subr.bf16.mxu0 %v5505_v21  ;;  %3812 = vmatprep.subr.bf16.mxu1 %v5508_v22  ;;  %v5587_v21 = vld [vmem:[#allocation4 + $0xd60] ss:$16 sps:$4 sm:$0xff]   ;;  %v5590_v22 = vld [vmem:[#allocation4 + $0xd68] ss:$16 sps:$4 sm:$0xff]  }
 0x1d1   :  { %3469 = vmatpush1.bf16.msra.mxu0 %v5503_v23  ;;  %3813 = vmatpush1.bf16.msra.mxu1 %v5506_v24  ;;  %v5595_v23 = vld [vmem:[#allocation4 + $0xd84] ss:$16 sps:$4 sm:$0xff]   ;;  %v5598_v24 = vld [vmem:[#allocation4 + $0xd8c] ss:$16 sps:$4 sm:$0xff]  }
 0x1d2   :  { %3470 = vmatprep.subr.bf16.mxu0 %v5511_v25  ;;  %3814 = vmatprep.subr.bf16.mxu1 %v5514_v26  ;;  %v5593_v25 = vld [vmem:[#allocation4 + $0xd80] ss:$16 sps:$4 sm:$0xff]   ;;  %v5596_v26 = vld [vmem:[#allocation4 + $0xd88] ss:$16 sps:$4 sm:$0xff]  }
 0x1d5   :  { %3471 = vmatpush1.bf16.msra.mxu0 %v5509_v27  ;;  %3815 = vmatpush1.bf16.msra.mxu1 %v5512_v28  ;;  %v5601_v27 = vld [vmem:[#allocation4 + $0xda4] ss:$16 sps:$4 sm:$0xff]   ;;  %v5604_v28 = vld [vmem:[#allocation4 + $0xdac] ss:$16 sps:$4 sm:$0xff]  }
 0x1d6   :  { %3472 = vmatprep.subr.bf16.mxu0 %v5517_v29  ;;  %3816 = vmatprep.subr.bf16.mxu1 %v5520_v30  ;;  %v5599_v29 = vld [vmem:[#allocation4 + $0xda0] ss:$16 sps:$4 sm:$0xff]   ;;  %v5602_v30 = vld [vmem:[#allocation4 + $0xda8] ss:$16 sps:$4 sm:$0xff]  }
 0x1d9   :  { %3473 = vmatpush1.bf16.msra.mxu0 %v5515_v31  ;;  %3817 = vmatpush1.bf16.msra.mxu1 %v5518_v32  ;;  %v5607_v31 = vld [vmem:[#allocation4 + $0xdc4] ss:$16 sps:$4 sm:$0xff]   ;;  %v5610_v32 = vld [vmem:[#allocation4 + $0xdcc] ss:$16 sps:$4 sm:$0xff]  }
 0x1da   :  { %3485 = vmatprep.subr.bf16.mxu0 %v5523_v35  ;;  %3829 = vmatprep.subr.bf16.mxu1 %v5526_v36  ;;  %v5613_v35 = vld [vmem:[#allocation4 + $0xde4] ss:$16 sps:$4 sm:$0xff]   ;;  %v5616_v36 = vld [vmem:[#allocation4 + $0xdec] ss:$16 sps:$4 sm:$0xff]  }
 0x1dc   :  { %3475 = vmatmul.mubr.bf16.vlgmr.msra.gmra.mrb[0].mxu0 %v127_v37  ;;  %3819 = vmatmul.mubr.bf16.vlgmr.msra.gmra.mrb[0].mxu1 %v127_v37  ;;  %v5611_v37 = vld [vmem:[#allocation4 + $0xde0] ss:$16 sps:$4 sm:$0xff]  }
 0x1dd   :  { %3486 = vmatpush1.bf16.msra.mxu0 %v5521_v40  ;;  %3830 = vmatpush1.bf16.msra.mxu1 %v5524_v41  ;;  %v113_v40 = vld [vmem:[#allocation2 + $0xe0] sm:$0xff] }
 0x1de   :  { %3487 = vmatprep.subr.bf16.mxu0 %v5529_v42  ;;  %3831 = vmatprep.subr.bf16.mxu1 %v5532_v43  ;;  %v5619_v41 = vld [vmem:[#allocation4 + $0xe04] ss:$16 sps:$4 sm:$0xff]   ;;  %v5622_v42 = vld [vmem:[#allocation4 + $0xe0c] ss:$16 sps:$4 sm:$0xff]   ;;  %v129_v43 = vpack.c.bf16 %v113_v40, %v97_v39  ;;  %v5701_v39 = vld [vmem:[#allocation4 + $0xfc0] ss:$16 sps:$4 sm:$0xff]  }
 0x1df   :  { %3517 = vmatprep.mubr.bf16.mxu0 %v130_v44  ;;  %3861 = vmatprep.mubr.bf16.mxu1 %v130_v44  ;;  %v100_v44 = vld [vmem:[#allocation2 + $0x78] sm:$0xff] }
 0x1e0   :  { %v5704_v40 = vld [vmem:[#allocation4 + $0xfc8] ss:$16 sps:$4 sm:$0xff]  }
 0x1e1   :  { %3488 = vmatpush1.bf16.msra.mxu0 %v5527_v45  ;;  %3832 = vmatpush1.bf16.msra.mxu1 %v5530_v46  ;;  %v116_v45 = vld [vmem:[#allocation2 + $0xf8] sm:$0xff]  ;;  %v5617_v46 = vld [vmem:[#allocation4 + $0xe00] ss:$16 sps:$4 sm:$0xff]  }
 0x1e2   :  { %3489 = vmatprep.subr.bf16.mxu0 %v5535_v47  ;;  %3833 = vmatprep.subr.bf16.mxu1 %v5538_v48  ;;  %v5620_v47 = vld [vmem:[#allocation4 + $0xe08] ss:$16 sps:$4 sm:$0xff]   ;;  %v5625_v48 = vld [vmem:[#allocation4 + $0xe24] ss:$16 sps:$4 sm:$0xff]  }
 0x1e5   :  { %3490 = vmatpush1.bf16.msra.mxu0 %v5533_v49  ;;  %3834 = vmatpush1.bf16.msra.mxu1 %v5536_v50  ;;  %v5628_v49 = vld [vmem:[#allocation4 + $0xe2c] ss:$16 sps:$4 sm:$0xff]   ;;  %v132_v50 = vpack.c.bf16 %v116_v45, %v100_v44  ;;  %v5710_v44 = vld [vmem:[#allocation4 + $0xfe8] ss:$16 sps:$4 sm:$0xff]   ;;  %v99_v45 = vld [vmem:[#allocation2 + $0x70] sm:$0xff] }
 0x1e6   :  { %3491 = vmatprep.subr.bf16.mxu0 %v5541_v51  ;;  %3835 = vmatprep.subr.bf16.mxu1 %v5544_v52  ;;  %v5623_v51 = vld [vmem:[#allocation4 + $0xe20] ss:$16 sps:$4 sm:$0xff]   ;;  %v5626_v52 = vld [vmem:[#allocation4 + $0xe28] ss:$16 sps:$4 sm:$0xff]  }
 0x1e9   :  { %3492 = vmatpush1.bf16.msra.mxu0 %v5539_v53  ;;  %3836 = vmatpush1.bf16.msra.mxu1 %v5542_v54  ;;  %v5631_v53 = vld [vmem:[#allocation4 + $0xe44] ss:$16 sps:$4 sm:$0xff]   ;;  %v5634_v54 = vld [vmem:[#allocation4 + $0xe4c] ss:$16 sps:$4 sm:$0xff]  }
 0x1ea   :  { %3493 = vmatprep.subr.bf16.mxu0 %v5547_v55  ;;  %3837 = vmatprep.subr.bf16.mxu1 %v5550_v56  ;;  %v5629_v55 = vld [vmem:[#allocation4 + $0xe40] ss:$16 sps:$4 sm:$0xff]   ;;  %v5632_v56 = vld [vmem:[#allocation4 + $0xe48] ss:$16 sps:$4 sm:$0xff]  }
 0x1ed   :  { %3494 = vmatpush1.bf16.msra.mxu0 %v5545_v57  ;;  %3838 = vmatpush1.bf16.msra.mxu1 %v5548_v58  ;;  %v5637_v57 = vld [vmem:[#allocation4 + $0xe64] ss:$16 sps:$4 sm:$0xff]   ;;  %v5640_v58 = vld [vmem:[#allocation4 + $0xe6c] ss:$16 sps:$4 sm:$0xff]  }
 0x1ee   :  { %3495 = vmatprep.subr.bf16.mxu0 %v5553_v59  ;;  %3839 = vmatprep.subr.bf16.mxu1 %v5556_v60  ;;  %v5635_v59 = vld [vmem:[#allocation4 + $0xe60] ss:$16 sps:$4 sm:$0xff]   ;;  %v5638_v60 = vld [vmem:[#allocation4 + $0xe68] ss:$16 sps:$4 sm:$0xff]  }
 0x1f1   :  { %3496 = vmatpush1.bf16.msra.mxu0 %v5551_v61  ;;  %3840 = vmatpush1.bf16.msra.mxu1 %v5554_v62  ;;  %v5643_v61 = vld [vmem:[#allocation4 + $0xe84] ss:$16 sps:$4 sm:$0xff]   ;;  %v5646_v62 = vld [vmem:[#allocation4 + $0xe8c] ss:$16 sps:$4 sm:$0xff]  }
 0x1f2   :  { %3497 = vmatprep.subr.bf16.mxu0 %v5559_v63  ;;  %3841 = vmatprep.subr.bf16.mxu1 %v5562_v0  ;;  %v5641_v63 = vld [vmem:[#allocation4 + $0xe80] ss:$16 sps:$4 sm:$0xff]   ;;  %v5644_v0 = vld [vmem:[#allocation4 + $0xe88] ss:$16 sps:$4 sm:$0xff]  }
 0x1f5   :  { %3498 = vmatpush1.bf16.msra.mxu0 %v5557_v1  ;;  %3842 = vmatpush1.bf16.msra.mxu1 %v5560_v2  ;;  %v5649_v1 = vld [vmem:[#allocation4 + $0xea4] ss:$16 sps:$4 sm:$0xff]   ;;  %v5652_v2 = vld [vmem:[#allocation4 + $0xeac] ss:$16 sps:$4 sm:$0xff]  }
 0x1f6   :  { %3499 = vmatprep.subr.bf16.mxu0 %v5565_v3  ;;  %3843 = vmatprep.subr.bf16.mxu1 %v5568_v4  ;;  %v5647_v3 = vld [vmem:[#allocation4 + $0xea0] ss:$16 sps:$4 sm:$0xff]   ;;  %v5650_v4 = vld [vmem:[#allocation4 + $0xea8] ss:$16 sps:$4 sm:$0xff]  }
 0x1f9   :  { %3500 = vmatpush1.bf16.msra.mxu0 %v5563_v5  ;;  %3844 = vmatpush1.bf16.msra.mxu1 %v5566_v6  ;;  %v5655_v5 = vld [vmem:[#allocation4 + $0xec4] ss:$16 sps:$4 sm:$0xff]   ;;  %v5658_v6 = vld [vmem:[#allocation4 + $0xecc] ss:$16 sps:$4 sm:$0xff]  }
 0x1fa   :  { %3501 = vmatprep.subr.bf16.mxu0 %v5571_v7  ;;  %3845 = vmatprep.subr.bf16.mxu1 %v5574_v8  ;;  %v5653_v7 = vld [vmem:[#allocation4 + $0xec0] ss:$16 sps:$4 sm:$0xff]   ;;  %v5656_v8 = vld [vmem:[#allocation4 + $0xec8] ss:$16 sps:$4 sm:$0xff]  }
 0x1fd   :  { %3502 = vmatpush1.bf16.msra.mxu0 %v5569_v9  ;;  %3846 = vmatpush1.bf16.msra.mxu1 %v5572_v10  ;;  %v5661_v9 = vld [vmem:[#allocation4 + $0xee4] ss:$16 sps:$4 sm:$0xff]   ;;  %v5664_v10 = vld [vmem:[#allocation4 + $0xeec] ss:$16 sps:$4 sm:$0xff]  }
 0x1fe   :  { %3503 = vmatprep.subr.bf16.mxu0 %v5577_v11  ;;  %3847 = vmatprep.subr.bf16.mxu1 %v5580_v12  ;;  %v5659_v11 = vld [vmem:[#allocation4 + $0xee0] ss:$16 sps:$4 sm:$0xff]   ;;  %v5662_v12 = vld [vmem:[#allocation4 + $0xee8] ss:$16 sps:$4 sm:$0xff]  }
 0x201   :  { %3504 = vmatpush1.bf16.msra.mxu0 %v5575_v13  ;;  %3848 = vmatpush1.bf16.msra.mxu1 %v5578_v14  ;;  %v5667_v13 = vld [vmem:[#allocation4 + $0xf04] ss:$16 sps:$4 sm:$0xff]   ;;  %v5670_v14 = vld [vmem:[#allocation4 + $0xf0c] ss:$16 sps:$4 sm:$0xff]  }
 0x202   :  { %3505 = vmatprep.subr.bf16.mxu0 %v5583_v15  ;;  %3849 = vmatprep.subr.bf16.mxu1 %v5586_v16  ;;  %v5665_v15 = vld [vmem:[#allocation4 + $0xf00] ss:$16 sps:$4 sm:$0xff]   ;;  %v5668_v16 = vld [vmem:[#allocation4 + $0xf08] ss:$16 sps:$4 sm:$0xff]  }
 0x205   :  { %3506 = vmatpush1.bf16.msra.mxu0 %v5581_v17  ;;  %3850 = vmatpush1.bf16.msra.mxu1 %v5584_v18  ;;  %v5673_v17 = vld [vmem:[#allocation4 + $0xf24] ss:$16 sps:$4 sm:$0xff]   ;;  %v5676_v18 = vld [vmem:[#allocation4 + $0xf2c] ss:$16 sps:$4 sm:$0xff]  }
 0x206   :  { %3507 = vmatprep.subr.bf16.mxu0 %v5589_v19  ;;  %3851 = vmatprep.subr.bf16.mxu1 %v5592_v20  ;;  %v5671_v19 = vld [vmem:[#allocation4 + $0xf20] ss:$16 sps:$4 sm:$0xff]   ;;  %v5674_v20 = vld [vmem:[#allocation4 + $0xf28] ss:$16 sps:$4 sm:$0xff]  }
 0x209   :  { %3508 = vmatpush1.bf16.msra.mxu0 %v5587_v21  ;;  %3852 = vmatpush1.bf16.msra.mxu1 %v5590_v22  ;;  %v5679_v21 = vld [vmem:[#allocation4 + $0xf44] ss:$16 sps:$4 sm:$0xff]   ;;  %v5682_v22 = vld [vmem:[#allocation4 + $0xf4c] ss:$16 sps:$4 sm:$0xff]  }
 0x20a   :  { %3509 = vmatprep.subr.bf16.mxu0 %v5595_v23  ;;  %3853 = vmatprep.subr.bf16.mxu1 %v5598_v24  ;;  %v5677_v23 = vld [vmem:[#allocation4 + $0xf40] ss:$16 sps:$4 sm:$0xff]   ;;  %v5680_v24 = vld [vmem:[#allocation4 + $0xf48] ss:$16 sps:$4 sm:$0xff]  }
 0x20d   :  { %3510 = vmatpush1.bf16.msra.mxu0 %v5593_v25  ;;  %3854 = vmatpush1.bf16.msra.mxu1 %v5596_v26  ;;  %v5685_v25 = vld [vmem:[#allocation4 + $0xf64] ss:$16 sps:$4 sm:$0xff]   ;;  %v5688_v26 = vld [vmem:[#allocation4 + $0xf6c] ss:$16 sps:$4 sm:$0xff]  }
 0x20e   :  { %3511 = vmatprep.subr.bf16.mxu0 %v5601_v27  ;;  %3855 = vmatprep.subr.bf16.mxu1 %v5604_v28  ;;  %v5683_v27 = vld [vmem:[#allocation4 + $0xf60] ss:$16 sps:$4 sm:$0xff]   ;;  %v5686_v28 = vld [vmem:[#allocation4 + $0xf68] ss:$16 sps:$4 sm:$0xff]  }
 0x211   :  { %3512 = vmatpush1.bf16.msra.mxu0 %v5599_v29  ;;  %3856 = vmatpush1.bf16.msra.mxu1 %v5602_v30  ;;  %v5691_v29 = vld [vmem:[#allocation4 + $0xf84] ss:$16 sps:$4 sm:$0xff]   ;;  %v5694_v30 = vld [vmem:[#allocation4 + $0xf8c] ss:$16 sps:$4 sm:$0xff]  }
 0x212   :  { %3513 = vmatprep.subr.bf16.mxu0 %v5607_v31  ;;  %3857 = vmatprep.subr.bf16.mxu1 %v5610_v32  ;;  %v5689_v31 = vld [vmem:[#allocation4 + $0xf80] ss:$16 sps:$4 sm:$0xff]   ;;  %v5692_v32 = vld [vmem:[#allocation4 + $0xf88] ss:$16 sps:$4 sm:$0xff]  }
 0x215   :  { %3514 = vmatpush1.bf16.msra.mxu0 %v5605_v33  ;;  %3858 = vmatpush1.bf16.msra.mxu1 %v5608_v34  ;;  %v5697_v33 = vld [vmem:[#allocation4 + $0xfa4] ss:$16 sps:$4 sm:$0xff]   ;;  %v5700_v34 = vld [vmem:[#allocation4 + $0xfac] ss:$16 sps:$4 sm:$0xff]  }
 0x216   :  { %3515 = vmatprep.subr.bf16.mxu0 %v5613_v35  ;;  %3859 = vmatprep.subr.bf16.mxu1 %v5616_v36  ;;  %v5695_v35 = vld [vmem:[#allocation4 + $0xfa0] ss:$16 sps:$4 sm:$0xff]   ;;  %v5698_v36 = vld [vmem:[#allocation4 + $0xfa8] ss:$16 sps:$4 sm:$0xff]  }
 0x219   :  { %3516 = vmatpush1.bf16.msra.mxu0 %v5611_v37  ;;  %3860 = vmatpush1.bf16.msra.mxu1 %v5614_v38  ;;  %v5703_v37 = vld [vmem:[#allocation4 + $0xfc4] ss:$16 sps:$4 sm:$0xff]   ;;  %v5706_v38 = vld [vmem:[#allocation4 + $0xfcc] ss:$16 sps:$4 sm:$0xff]  }
 0x21a   :  { %3528 = vmatprep.subr.bf16.mxu0 %v5619_v41  ;;  %3872 = vmatprep.subr.bf16.mxu1 %v5622_v42  ;;  %v5709_v41 = vld [vmem:[#allocation4 + $0xfe4] ss:$16 sps:$4 sm:$0xff]   ;;  %v5712_v42 = vld [vmem:[#allocation4 + $0xfec] ss:$16 sps:$4 sm:$0xff]  }
 0x21c   :  { %3518 = vmatmul.mubr.bf16.vlgmr.msra.gmra.mrb[0].mxu0 %v129_v43  ;;  %3862 = vmatmul.mubr.bf16.vlgmr.msra.gmra.mrb[0].mxu1 %v129_v43  ;;  %v5707_v43 = vld [vmem:[#allocation4 + $0xfe0] ss:$16 sps:$4 sm:$0xff]  }
 0x21d   :  { %3529 = vmatpush1.bf16.msra.mxu0 %v5617_v46  ;;  %3873 = vmatpush1.bf16.msra.mxu1 %v5620_v47  ;;  %v115_v46 = vld [vmem:[#allocation2 + $0xf0] sm:$0xff]  ;;  %v5713_v47 = vld [vmem:[#allocation7 + $0x40] sm:$0xff]  }
 0x21e   :  { %3530 = vmatprep.subr.bf16.mxu0 %v5625_v48  ;;  %3874 = vmatprep.subr.bf16.mxu1 %v5628_v49  ;;  %v5714_v48 = vld [vmem:[#allocation7 + $0xc0] sm:$0xff]   ;;  %v131_v49 = vpack.c.bf16 %v115_v46, %v99_v45 }
 0x21f   :  { %3560 = vmatprep.mubr.bf16.mxu0 %v132_v50  ;;  %3904 = vmatprep.mubr.bf16.mxu1 %v132_v50  ;;  %v5715_v50 = vld [vmem:[#allocation7] sm:$0xff]  }
 0x221   :  { %3531 = vmatpush1.bf16.msra.mxu0 %v5623_v51  ;;  %3875 = vmatpush1.bf16.msra.mxu1 %v5626_v52  ;;  %v5716_v51 = vld [vmem:[#allocation7 + $0x80] sm:$0xff]   ;;  %v5717_v52 = vld [vmem:[#allocation7 + $0x48] sm:$0xff]  }
 0x222   :  { %3532 = vmatprep.subr.bf16.mxu0 %v5631_v53  ;;  %3876 = vmatprep.subr.bf16.mxu1 %v5634_v54  ;;  %v5718_v53 = vld [vmem:[#allocation7 + $0xc8] sm:$0xff]  }
 0x223   :  { %v5719_v54 = vld [vmem:[#allocation7 + $0x8] sm:$0xff]  }
 0x225   :  { %3533 = vmatpush1.bf16.msra.mxu0 %v5629_v55  ;;  %3877 = vmatpush1.bf16.msra.mxu1 %v5632_v56  ;;  %v5720_v55 = vld [vmem:[#allocation7 + $0x88] sm:$0xff]   ;;  %v5721_v56 = vld [vmem:[#allocation7 + $0x50] sm:$0xff]  }
 0x226   :  { %3534 = vmatprep.subr.bf16.mxu0 %v5637_v57  ;;  %3878 = vmatprep.subr.bf16.mxu1 %v5640_v58  ;;  %v5722_v57 = vld [vmem:[#allocation7 + $0xd0] sm:$0xff]  }
 0x227   :  { %v5723_v58 = vld [vmem:[#allocation7 + $0x10] sm:$0xff]  }
 0x229   :  { %3535 = vmatpush1.bf16.msra.mxu0 %v5635_v59  ;;  %3879 = vmatpush1.bf16.msra.mxu1 %v5638_v60  ;;  %v5724_v59 = vld [vmem:[#allocation7 + $0x90] sm:$0xff]   ;;  %v5725_v60 = vld [vmem:[#allocation7 + $0x58] sm:$0xff]  }
 0x22a   :  { %3536 = vmatprep.subr.bf16.mxu0 %v5643_v61  ;;  %3880 = vmatprep.subr.bf16.mxu1 %v5646_v62  ;;  %v5726_v61 = vld [vmem:[#allocation7 + $0xd8] sm:$0xff]  }
 0x22b   :  { %v5727_v62 = vld [vmem:[#allocation7 + $0x18] sm:$0xff]  }
 0x22d   :  { %3537 = vmatpush1.bf16.msra.mxu0 %v5641_v63  ;;  %3881 = vmatpush1.bf16.msra.mxu1 %v5644_v0  ;;  %v5728_v63 = vld [vmem:[#allocation7 + $0x98] sm:$0xff]   ;;  %v5729_v0 = vld [vmem:[#allocation7 + $0x60] sm:$0xff]  }
 0x22e   :  { %3538 = vmatprep.subr.bf16.mxu0 %v5649_v1  ;;  %3882 = vmatprep.subr.bf16.mxu1 %v5652_v2  ;;  %v5730_v1 = vld [vmem:[#allocation7 + $0xe0] sm:$0xff]  }
 0x22f   :  { %v5731_v2 = vld [vmem:[#allocation7 + $0x20] sm:$0xff]  }
 0x231   :  { %3539 = vmatpush1.bf16.msra.mxu0 %v5647_v3  ;;  %3883 = vmatpush1.bf16.msra.mxu1 %v5650_v4  ;;  %v5732_v3 = vld [vmem:[#allocation7 + $0xa0] sm:$0xff]   ;;  %v5733_v4 = vld [vmem:[#allocation7 + $0x68] sm:$0xff]  }
 0x232   :  { %3540 = vmatprep.subr.bf16.mxu0 %v5655_v5  ;;  %3884 = vmatprep.subr.bf16.mxu1 %v5658_v6  ;;  %v5734_v5 = vld [vmem:[#allocation7 + $0xe8] sm:$0xff]  }
 0x233   :  { %v5735_v6 = vld [vmem:[#allocation7 + $0x28] sm:$0xff]  }
 0x235   :  { %3541 = vmatpush1.bf16.msra.mxu0 %v5653_v7  ;;  %3885 = vmatpush1.bf16.msra.mxu1 %v5656_v8  ;;  %v5736_v7 = vld [vmem:[#allocation7 + $0xa8] sm:$0xff]   ;;  %v5737_v8 = vld [vmem:[#allocation7 + $0x70] sm:$0xff]  }
 0x236   :  { %3542 = vmatprep.subr.bf16.mxu0 %v5661_v9  ;;  %3886 = vmatprep.subr.bf16.mxu1 %v5664_v10  ;;  %v5738_v9 = vld [vmem:[#allocation7 + $0xf0] sm:$0xff]  }
 0x237   :  { %v5739_v10 = vld [vmem:[#allocation7 + $0x30] sm:$0xff]  }
 0x239   :  { %3543 = vmatpush1.bf16.msra.mxu0 %v5659_v11  ;;  %3887 = vmatpush1.bf16.msra.mxu1 %v5662_v12  ;;  %v5740_v11 = vld [vmem:[#allocation7 + $0xb0] sm:$0xff]   ;;  %v5741_v12 = vld [vmem:[#allocation7 + $0x78] sm:$0xff]  }
 0x23a   :  { %3544 = vmatprep.subr.bf16.mxu0 %v5667_v13  ;;  %3888 = vmatprep.subr.bf16.mxu1 %v5670_v14  ;;  %v5742_v13 = vld [vmem:[#allocation7 + $0xf8] sm:$0xff]  }
 0x23b   :  { %v5743_v14 = vld [vmem:[#allocation7 + $0x38] sm:$0xff]  }
 0x23d   :  { %3545 = vmatpush1.bf16.msra.mxu0 %v5665_v15  ;;  %3889 = vmatpush1.bf16.msra.mxu1 %v5668_v16  ;;  %v5744_v15 = vld [vmem:[#allocation7 + $0xb8] sm:$0xff]   ;;  %v647_v16 = vlaneseq }
 0x23e   :  { %3546 = vmatprep.subr.bf16.mxu0 %v5673_v17  ;;  %3890 = vmatprep.subr.bf16.mxu1 %v5676_v18 }
 0x23f   :  { %v648_v17 = vshrl.u32 %v647_v16, 7 }
 0x241   :  { %3547 = vmatpush1.bf16.msra.mxu0 %v5671_v19  ;;  %3891 = vmatpush1.bf16.msra.mxu1 %v5674_v20  ;;  %v649_v18 = vsub.s32 0, %v648_v17  ;;  %v657_v19 = vsub.s32 2, %v648_v17  ;;  %v645_v20 = vld [vmem:[#allocation6] sm:$0xf] }
 0x242   :  { %3548 = vmatprep.subr.bf16.mxu0 %v5679_v21  ;;  %3892 = vmatprep.subr.bf16.mxu1 %v5682_v22  ;;  %v653_v21 = vsub.s32 1, %v648_v17  ;;  %v661_v22 = vsub.s32 3, %v648_v17 }
 0x245   :  { %3549 = vmatpush1.bf16.msra.mxu0 %v5677_v23  ;;  %3893 = vmatpush1.bf16.msra.mxu1 %v5680_v24  ;;  %v650_v23 = vrot.slane %v645_v20, %v649_v18  ;;  %v658_v24 = vrot.slane %v645_v20, %v657_v19 }
 0x246   :  { %3550 = vmatprep.subr.bf16.mxu0 %v5685_v25  ;;  %3894 = vmatprep.subr.bf16.mxu1 %v5688_v26  ;;  %v654_v25 = vrot.slane %v645_v20, %v653_v21  ;;  %v662_v26 = vrot.slane %v645_v20, %v661_v22 }
 0x249   :  { %3551 = vmatpush1.bf16.msra.mxu0 %v5683_v27  ;;  %3895 = vmatpush1.bf16.msra.mxu1 %v5686_v28 }
 0x24a   :  { %3552 = vmatprep.subr.bf16.mxu0 %v5691_v29  ;;  %3896 = vmatprep.subr.bf16.mxu1 %v5694_v30 }
 0x24d   :  { %3553 = vmatpush1.bf16.msra.mxu0 %v5689_v31  ;;  %3897 = vmatpush1.bf16.msra.mxu1 %v5692_v32 }
 0x24e   :  { %3554 = vmatprep.subr.bf16.mxu0 %v5697_v33  ;;  %3898 = vmatprep.subr.bf16.mxu1 %v5700_v34 }
 0x251   :  { %3555 = vmatpush1.bf16.msra.mxu0 %v5695_v35  ;;  %3899 = vmatpush1.bf16.msra.mxu1 %v5698_v36 }
 0x252   :  { %3556 = vmatprep.subr.bf16.mxu0 %v5703_v37  ;;  %3900 = vmatprep.subr.bf16.mxu1 %v5706_v38 }
 0x255   :  { %3557 = vmatpush1.bf16.msra.mxu0 %v5701_v39  ;;  %3901 = vmatpush1.bf16.msra.mxu1 %v5704_v40 }
 0x256   :  { %3558 = vmatprep.subr.bf16.mxu0 %v5709_v41  ;;  %3902 = vmatprep.subr.bf16.mxu1 %v5712_v42 }
 0x259   :  { %3559 = vmatpush1.bf16.msra.mxu0 %v5707_v43  ;;  %3903 = vmatpush1.bf16.msra.mxu1 %v5710_v44 }
 0x25a   :  { %4826 = vmatprep.subr.bf16.mxu0 %v5713_v47  ;;  %4848 = vmatprep.subr.bf16.mxu1 %v5714_v48 }
 0x25c   :  { %3561 = vmatmul.mubr.bf16.vlgmr.msra.gmra.mrb[0].mxu0 %v131_v49  ;;  %3905 = vmatmul.mubr.bf16.vlgmr.msra.gmra.mrb[0].mxu1 %v131_v49 }
 0x25d   :  { %4827 = vmatpush3.bf16.msra.mxu0 %v5715_v50  ;;  %4849 = vmatpush3.bf16.msra.mxu1 %v5716_v51 }
 0x25e   :  { %4828 = vmatprep.subr.bf16.mxu0 %v5717_v52  ;;  %4850 = vmatprep.subr.bf16.mxu1 %v5718_v53 }
 0x261   :  { %4829 = vmatpush3.bf16.msra.mxu0 %v5719_v54  ;;  %4851 = vmatpush3.bf16.msra.mxu1 %v5720_v55 }
 0x262   :  { %4830 = vmatprep.subr.bf16.mxu0 %v5721_v56  ;;  %4852 = vmatprep.subr.bf16.mxu1 %v5722_v57  ;;  %v4793_v57 = vld [vmem:[#allocation9] ss:$0 sm:$0xff] }
 0x265   :  { %4831 = vmatpush3.bf16.msra.mxu0 %v5723_v58  ;;  %4853 = vmatpush3.bf16.msra.mxu1 %v5724_v59 }
 0x266   :  { %4832 = vmatprep.subr.bf16.mxu0 %v5725_v60  ;;  %4854 = vmatprep.subr.bf16.mxu1 %v5726_v61 }
 0x269   :  { %4833 = vmatpush3.bf16.msra.mxu0 %v5727_v62  ;;  %4855 = vmatpush3.bf16.msra.mxu1 %v5728_v63 }
 0x26a   :  { %4834 = vmatprep.subr.bf16.mxu0 %v5729_v0  ;;  %4856 = vmatprep.subr.bf16.mxu1 %v5730_v1 }
 0x26d   :  { %4835 = vmatpush3.bf16.msra.mxu0 %v5731_v2  ;;  %4857 = vmatpush3.bf16.msra.mxu1 %v5732_v3 }
 0x26e   :  { %4836 = vmatprep.subr.bf16.mxu0 %v5733_v4  ;;  %4858 = vmatprep.subr.bf16.mxu1 %v5734_v5 }
 0x271   :  { %4837 = vmatpush3.bf16.msra.mxu0 %v5735_v6  ;;  %4859 = vmatpush3.bf16.msra.mxu1 %v5736_v7 }
 0x272   :  { %4838 = vmatprep.subr.bf16.mxu0 %v5737_v8  ;;  %4860 = vmatprep.subr.bf16.mxu1 %v5738_v9 }
 0x275   :  { %4839 = vmatpush3.bf16.msra.mxu0 %v5739_v10  ;;  %4861 = vmatpush3.bf16.msra.mxu1 %v5740_v11 }
 0x276   :  { %4840 = vmatprep.subr.bf16.mxu0 %v5741_v12  ;;  %4862 = vmatprep.subr.bf16.mxu1 %v5742_v13 }
 0x279   :  { %4841 = vmatpush3.bf16.msra.mxu0 %v5743_v14  ;;  %4863 = vmatpush3.bf16.msra.mxu1 %v5744_v15 }
 0x32f   :  { %v3562_v27 = vpop.f32.mrb[0].mxu0  ;;  %v3906_v28 = vpop.f32.mrb[0].mxu1 }
 0x330   :  { %v4870_v29 = vadd.f32 %v3562_v27, %v650_v23  ;;  %v4874_v30 = vadd.f32 %v3906_v28, %v658_v24  ;;  %v3564_v31 = vpop.f32.mrb[1].mxu0  ;;  %v3908_v32 = vpop.f32.mrb[1].mxu1 }
 0x331   :  { %v4871_v33 = vadd.f32 %v3564_v31, %v654_v25  ;;  %v4875_v34 = vadd.f32 %v3908_v32, %v662_v26  ;;  %v3566_v35 = vpop.f32.mrb[2].mxu0  ;;  %v3910_v36 = vpop.f32.mrb[2].mxu1 }
 0x332   :  { %v4872_v37 = vadd.f32 %v3566_v35, %v650_v23  ;;  %v4876_v38 = vadd.f32 %v3910_v36, %v658_v24  ;;  %v3568_v39 = vpop.f32.mrb[3].mxu0  ;;  %v3912_v40 = vpop.f32.mrb[3].mxu1  ;;  %v3915_v43 = vmax.f32 %v4870_v29, 0.0  ;;  %v3917_v44 = vmax.f32 %v4874_v30, 0.0 }
 0x333   :  { %v4873_v41 = vadd.f32 %v3568_v39, %v654_v25  ;;  %v4877_v42 = vadd.f32 %v3912_v40, %v662_v26  ;;  %v3916_v47 = vmax.f32 %v4871_v33, 0.0  ;;  %v3918_v48 = vmax.f32 %v4875_v34, 0.0 }
 0x334   :  { %v3919_v45 = vmax.f32 %v4872_v37, 0.0  ;;  %v3921_v46 = vmax.f32 %v4876_v38, 0.0 }
 0x335   :  { %v3920_v49 = vmax.f32 %v4873_v41, 0.0  ;;  %v3922_v50 = vmax.f32 %v4877_v42, 0.0 }
 0x336   :  { %v3923_v51 = vpack.c.bf16 %v3919_v45, %v3915_v43  ;;  %v3925_v52 = vpack.c.bf16 %v3921_v46, %v3917_v44 }
 0x337   :  { %v3924_v53 = vpack.c.bf16 %v3920_v49, %v3916_v47  ;;  %v3926_v54 = vpack.c.bf16 %v3922_v50, %v3918_v48 }
 0x339   :  { %4222 = vmatprep.mubr.bf16.mxu0 %v3924_v53  ;;  %4263 = vmatprep.mubr.bf16.mxu1 %v3926_v54 }
 0x33a   :  { %4223 = vmatmul.mubr.bf16.vlgmr.msra.gmra.mrb[4].mxu0 %v3923_v51  ;;  %4264 = vmatmul.mubr.bf16.vlgmr.msra.gmra.mrb[4].mxu1 %v3925_v52 }
 0x40d   :  { %v4842_v55 = vpop.f32.mrb[4].mxu0  ;;  %v4864_v56 = vpop.f32.mrb[4].mxu1 }
 0x40e   :  { %v4843_v58 = vpop.f32.mrb[5].mxu0  ;;  %v4865_v59 = vpop.f32.mrb[5].mxu1 }
 0x40f   :  { %v4844_v60 = vadd.f32 %v4843_v58, %v4842_v55  ;;  %v4866_v61 = vadd.f32 %v4865_v59, %v4864_v56  ;;  %v4845_v62 = vpop.f32.mrb[6].mxu0  ;;  %v4867_v63 = vpop.f32.mrb[6].mxu1 }
 0x410   :  { %v4846_v0 = vpop.f32.mrb[7].mxu0  ;;  %v4868_v1 = vpop.f32.mrb[7].mxu1 }
 0x411   :  { %v4225_v2 = vadd.f32 %v4844_v60, %v4793_v57  ;;  %v4847_v3 = vadd.f32 %v4846_v0, %v4845_v62  ;;  %v4869_v4 = vadd.f32 %v4868_v1, %v4867_v63 }
 0x413   :  { %v4266_v5 = vadd.f32 %v4866_v61, %v4225_v2  ;;  %v4228_v6 = vadd.f32 %v4847_v3, %v4793_v57 }
 0x415   :  { %4272 = vst [vmem:[%s5973_s5] sm:$0xff] %v4266_v5  ;;  %v4269_v7 = vadd.f32 %v4869_v4, %v4228_v6 }
 0x417   :  { %4273 = vst [vmem:[%s5973_s5 + $0x8] sm:$0xff] %v4269_v7 }
 0x418   :  { %4278 = vsyncpa [#allocation3], 1 }
 0x419   :  { %4279 = vsyncpa [#allocation5], 1 }
 0x41a   :  { %4280 = vsyncpa [#allocation8], 1 }

</bundles_post_ra>
